<compile_context>
chip_gen: v7x
topology: tpu7x:2x2x1
jax: 0.10.0
libtpu: 0.0.40
codegen_flags: <defaults>
</compile_context>

<pallas_src>
import functools

import jax
import jax.numpy as jnp
from jax.experimental import pallas as pl
from jax.experimental.pallas import tpu as pltpu

LANE = 128


def _round_up(x, m):
    return (x + m - 1) // m * m


# ---------------------------------------------------------------------------
# Fused DLRM kernel: bottom MLP -> dot interaction -> top MLP, per batch tile.
# ---------------------------------------------------------------------------
def _make_fused_kernel(*, n_bottom, n_top, dim, n_sparse,
                       bottom_sigmoid_pos, top_sigmoid_pos, compute_dtype):
    num_feat = 1 + n_sparse

    def _act(y, idx, sigmoid_pos):
        if sigmoid_pos is not None and idx == sigmoid_pos:
            return jax.nn.sigmoid(y)
        return jnp.maximum(y, 0.0)

    def kernel(*refs):
        x_ref = refs[0]
        emb_refs = refs[1:1 + n_sparse]
        w_refs = refs[1 + n_sparse:-1]
        o_ref = refs[-1]
        bottom = [(w_refs[2 * i], w_refs[2 * i + 1]) for i in range(n_bottom)]
        top = [(w_refs[2 * (n_bottom + i)], w_refs[2 * (n_bottom + i) + 1])
               for i in range(n_top)]

        # ---- bottom MLP (bf16 MXU matmuls, f32 accumulation, f32 epilogue) ----
        h = x_ref[...].astype(compute_dtype)
        for i, (wt, b) in enumerate(bottom):
            y = jnp.dot(h, wt[...], preferred_element_type=jnp.float32) + b[...]
            h = _act(y, i, bottom_sigmoid_pos).astype(compute_dtype)
        dx = h[:, :dim]                                   # [TB, dim] compute dtype
        dx_f32 = dx.astype(jnp.float32)

        # ---- dot interaction folded into top-MLP layer 0 ----
        feats = [dx_f32] + [r[...].astype(jnp.float32) for r in emb_refs]
        wt0, b0 = top[0]
        w0 = wt0[...]                                     # [K0p, N0p] bf16
        # dx head rows hit the MXU directly in bf16 (no f32 round-trip).
        y = jnp.dot(dx, w0[:dim, :], preferred_element_type=jnp.float32) + b0[...]
        w0_f32 = w0.astype(jnp.float32)
        k = 0
        for i in range(num_feat):                         # tril order incl. diagonal
            for j in range(i + 1):
                # pairwise dot product on VPU (mul) + XLU (lane reduce): [TB, 1]
                p = jnp.sum(feats[i] * feats[j], axis=-1, keepdims=True)
                y = y + p * w0_f32[dim + k:dim + k + 1, :]
                k += 1
        h = _act(y, 0, top_sigmoid_pos)

        # ---- remaining top-MLP layers ----
        for i in range(1, n_top):
            wt, b = top[i]
            y = jnp.dot(h.astype(compute_dtype), wt[...],
                        preferred_element_type=jnp.float32) + b[...]
            h = _act(y, i, top_sigmoid_pos)

        # Lane-dense store of the full padded width; wrapper slices to out_dim.
        o_ref[...] = h.astype(o_ref.dtype)

    return kernel


# ---------------------------------------------------------------------------
# Forward wrapper
# ---------------------------------------------------------------------------
def dlrm_forward(dense_inputs, sparse_inputs, params, *, cfg, block_b=128):
    B, d0 = dense_inputs.shape
    dim = cfg["dim"]
    out_dim = cfg["out_dim"]
    compute_dtype = cfg["compute_dtype"]
    tables = params["emb_tables"]
    bottom = params["bottom_mlp"]
    top = params["top_mlp"]
    n_sparse = len(tables)
    num_feat = 1 + n_sparse

    # TODO(synk): for production-size tables move this gather into the kernel via
    # PrefetchScalarGridSpec (indices in SMEM) + manual make_async_copy row DMAs.
    embs = [jnp.take(tbl, sparse_inputs[:, i], axis=0) for i, tbl in enumerate(tables)]

    tb = min(block_b, _round_up(B, 8))
    bp = _round_up(B, tb)
    d0_pad = bottom[0][0].shape[0]                        # padded K of first layer
    n_last_pad = top[-1][0].shape[1]                      # padded N of last layer

    x = jnp.zeros((bp, d0_pad), jnp.float32).at[:B, :d0].set(
        dense_inputs.astype(jnp.float32))
    if bp != B:
        embs = [jnp.zeros((bp, dim), e.dtype).at[:B].set(e) for e in embs]

    kernel = _make_fused_kernel(
        n_bottom=len(bottom), n_top=len(top), dim=dim, n_sparse=n_sparse,
        bottom_sigmoid_pos=cfg["bottom_sigmoid_pos"],
        top_sigmoid_pos=cfg["top_sigmoid_pos"], compute_dtype=compute_dtype)

    in_specs = [pl.BlockSpec((tb, d0_pad), lambda i: (i, 0))]
    in_specs += [pl.BlockSpec((tb, dim), lambda i: (i, 0)) for _ in range(n_sparse)]
    flat_w = []
    for wt, b in bottom + top:
        # Constant block index -> weights stay VMEM-resident across the grid.
        in_specs.append(pl.BlockSpec(wt.shape, lambda i: (0, 0)))
        in_specs.append(pl.BlockSpec(b.shape, lambda i: (0, 0)))
        flat_w += [wt, b]

    mm_flops = 2 * sum(int(w.shape[0]) * int(w.shape[1]) for w, _ in bottom + top)
    inter_flops = 2 * num_feat * num_feat * dim
    weight_bytes = sum(int(w.size) * w.dtype.itemsize + int(b.size) * b.dtype.itemsize
                       for w, b in bottom + top)
    act_bytes = (int(x.size) * 4
                 + sum(int(e.size) * e.dtype.itemsize for e in embs)
                 + int(bp) * n_last_pad * 4)
    cost = pl.CostEstimate(flops=int(bp * (mm_flops + inter_flops)),
                           transcendentals=int(bp * LANE),
                           bytes_accessed=int(weight_bytes + act_bytes))

    out = pl.pallas_call(
        kernel,
        out_shape=jax.ShapeDtypeStruct((bp, n_last_pad), jnp.float32),
        grid=(bp // tb,),
        in_specs=in_specs,
        out_specs=pl.BlockSpec((tb, n_last_pad), lambda i: (i, 0)),
        compiler_params=pltpu.CompilerParams(
            dimension_semantics=("parallel",),
            vmem_limit_bytes=32 * 1024 * 1024),
        cost_estimate=cost,
    )(x, *embs, *flat_w)
    return out[:B, :out_dim]


# ---------------------------------------------------------------------------
# Parameter init: PyTorch-Linear uniform bounds, then pre-transpose / pad / cast
# once (W^T padded to [Kp, Np] multiples of 128 lanes, bf16; bias f32 [1, Np]).
# ---------------------------------------------------------------------------
def _init_linear(key, in_dim, out_dim):
    kw, kb = jax.random.split(key)
    bound = 1.0 / (in_dim ** 0.5)
    w = jax.random.uniform(kw, (out_dim, in_dim), jnp.float32, -bound, bound)
    b = jax.random.uniform(kb, (out_dim,), jnp.float32, -bound, bound)
    return w, b


def _prepare_linear(w, b, dtype):
    out_d, in_d = w.shape
    kp, np_ = _round_up(in_d, LANE), _round_up(out_d, LANE)
    wt = jnp.zeros((kp, np_), jnp.float32).at[:in_d, :out_d].set(w.T).astype(dtype)
    bp = jnp.zeros((1, np_), jnp.float32).at[0, :out_d].set(b)
    return wt, bp


def init_dlrm(key, dim, emb_sizes, bottom_mlp_dims, top_mlp_dims,
              bottom_sigmoid_pos, top_sigmoid_pos, compute_dtype=jnp.bfloat16):
    num_feat = 1 + len(emb_sizes)
    num_pairs = num_feat * (num_feat + 1) // 2
    assert bottom_mlp_dims[-1] == dim
    assert top_mlp_dims[0] == dim + num_pairs

    k_emb, k_bot, k_top = jax.random.split(key, 3)
    emb_keys = jax.random.split(k_emb, len(emb_sizes))
    tables = [0.05 * jax.random.normal(k, (n, dim), jnp.float32)
              for k, n in zip(emb_keys, emb_sizes)]

    def init_mlp(k, dims):
        keys = jax.random.split(k, len(dims) - 1)
        raw = [_init_linear(kk, dims[i], dims[i + 1]) for i, kk in enumerate(keys)]
        return [_prepare_linear(w, b, compute_dtype) for w, b in raw]

    params = {
        "emb_tables": tables,
        "bottom_mlp": init_mlp(k_bot, bottom_mlp_dims),
        "top_mlp": init_mlp(k_top, top_mlp_dims),
    }
    cfg = dict(dim=dim, out_dim=top_mlp_dims[-1],
               bottom_sigmoid_pos=bottom_sigmoid_pos,
               top_sigmoid_pos=top_sigmoid_pos,
               compute_dtype=compute_dtype)
    return cfg, params


# ---------------------------------------------------------------------------
# Pure-JAX f32 reference (uses the same bf16-rounded weights for a tight check).
# ---------------------------------------------------------------------------
def dlrm_reference(dense, sparse, params, cfg, bottom_dims, top_dims):
    def mlp(h, layers, dims, sigmoid_pos):
        for i, (wt, b) in enumerate(layers):
            in_d, out_d = dims[i], dims[i + 1]
            y = h @ wt[:in_d, :out_d].astype(jnp.float32) + b[0, :out_d]
            h = jax.nn.sigmoid(y) if (sigmoid_pos is not None and i == sigmoid_pos) \
                else jnp.maximum(y, 0.0)
        return h

    dx = mlp(dense.astype(jnp.float32), params["bottom_mlp"], bottom_dims,
             cfg["bottom_sigmoid_pos"])
    sx = [tbl[sparse[:, i]] for i, tbl in enumerate(params["emb_tables"])]
    T = jnp.stack([dx] + sx, axis=1)                       # [B, F, dim]
    Z = jnp.einsum("bfd,bgd->bfg", T, T)
    li, lj = jnp.tril_indices(T.shape[1])
    inter = jnp.concatenate([dx, Z[:, li, lj]], axis=1)
    return mlp(inter, params["top_mlp"], top_dims, cfg["top_sigmoid_pos"])


# ---------------------------------------------------------------------------
if __name__ == "__main__":
    key = jax.random.PRNGKey(0)

    batch = 256                               # 2 grid steps with block_b=128
    dim = 16
    emb_sizes = [10, 20, 30]
    bottom_mlp_dims = [13, 64, dim]
    num_feat = 1 + len(emb_sizes)
    num_pairs = num_feat * (num_feat + 1) // 2
    top_mlp_dims = [dim + num_pairs, 32, 1]   # [26, 32, 1]
    bottom_sigmoid_pos = None
    top_sigmoid_pos = len(top_mlp_dims) - 2   # sigmoid on the final layer

    k_params, k_dense, k_sparse = jax.random.split(key, 3)
    cfg, params = init_dlrm(k_params, dim, emb_sizes, bottom_mlp_dims, top_mlp_dims,
                            bottom_sigmoid_pos, top_sigmoid_pos)

    dense_inputs = jax.random.normal(k_dense, (batch, bottom_mlp_dims[0]), jnp.float32)
    sparse_keys = jax.random.split(k_sparse, len(emb_sizes))
    sparse_inputs = jnp.stack(
        [jax.random.randint(k, (batch,), 0, n, jnp.int32)
         for k, n in zip(sparse_keys, emb_sizes)],
        axis=1,
    )  # [batch, num_sparse_fields]

    fwd = jax.jit(functools.partial(dlrm_forward, cfg=cfg, block_b=128))
    out = fwd(dense_inputs, sparse_inputs, params)
    out = jax.block_until_ready(out)

    assert out.shape == (batch, 1), out.shape
    assert bool(jnp.all(jnp.isfinite(out)))
    assert bool(jnp.all((out >= 0.0) & (out <= 1.0)))     # sigmoid output

    ref = dlrm_reference(dense_inputs, sparse_inputs, params, cfg,
                         bottom_mlp_dims, top_mlp_dims)
    max_err = float(jnp.max(jnp.abs(out - ref)))
    assert max_err < 5e-2, f"max abs error vs reference: {max_err}"

    print("KERNEL_OK")
</pallas_src>

<mosaic_0001>
module attributes {stable_mosaic.version = 11 : i64} {
  func.func @kernel(%arg0: i32, %arg1: memref<128x128xf32, #tpu.memory_space<vmem>>, %arg2: memref<128x16xf32, #tpu.memory_space<vmem>>, %arg3: memref<128x16xf32, #tpu.memory_space<vmem>>, %arg4: memref<128x16xf32, #tpu.memory_space<vmem>>, %arg5: memref<128x128xbf16, #tpu.memory_space<vmem>>, %arg6: memref<1x128xf32, #tpu.memory_space<vmem>>, %arg7: memref<128x128xbf16, #tpu.memory_space<vmem>>, %arg8: memref<1x128xf32, #tpu.memory_space<vmem>>, %arg9: memref<128x128xbf16, #tpu.memory_space<vmem>>, %arg10: memref<1x128xf32, #tpu.memory_space<vmem>>, %arg11: memref<128x128xbf16, #tpu.memory_space<vmem>>, %arg12: memref<1x128xf32, #tpu.memory_space<vmem>>, %arg13: memref<128x128xf32, #tpu.memory_space<vmem>>) attributes {dimension_semantics = [#tpu.dimension_semantics<parallel>], iteration_bounds = array<i64: 2>, scalar_prefetch = 0 : i64, scratch_operands = 0 : i64, tpu.core_type = #tpu.core_type<tc>, window_params = [{transform_indices = @transform_0, window_bounds = array<i64: 128, 128>}, {transform_indices = @transform_1, window_bounds = array<i64: 128, 16>}, {transform_indices = @transform_2, window_bounds = array<i64: 128, 16>}, {transform_indices = @transform_3, window_bounds = array<i64: 128, 16>}, {pipeline_mode = #tpu.pipeline_mode<synchronous>, transform_indices = @transform_4, window_bounds = array<i64: 128, 128>}, {pipeline_mode = #tpu.pipeline_mode<synchronous>, transform_indices = @transform_5, window_bounds = array<i64: 1, 128>}, {pipeline_mode = #tpu.pipeline_mode<synchronous>, transform_indices = @transform_6, window_bounds = array<i64: 128, 128>}, {pipeline_mode = #tpu.pipeline_mode<synchronous>, transform_indices = @transform_7, window_bounds = array<i64: 1, 128>}, {pipeline_mode = #tpu.pipeline_mode<synchronous>, transform_indices = @transform_8, window_bounds = array<i64: 128, 128>}, {pipeline_mode = #tpu.pipeline_mode<synchronous>, transform_indices = @transform_9, window_bounds = array<i64: 1, 128>}, {pipeline_mode = #tpu.pipeline_mode<synchronous>, transform_indices = @transform_10, window_bounds = array<i64: 128, 128>}, {pipeline_mode = #tpu.pipeline_mode<synchronous>, transform_indices = @transform_11, window_bounds = array<i64: 1, 128>}, {transform_indices = @transform_12, window_bounds = array<i64: 128, 128>}]} {
    %c0 = arith.constant 0 : index
    %c0_0 = arith.constant 0 : index
    %0 = vector.load %arg1[%c0, %c0_0] : memref<128x128xf32, #tpu.memory_space<vmem>>, vector<128x128xf32>
    %1 = arith.truncf %0 : vector<128x128xf32> to vector<128x128xbf16>
    %c0_1 = arith.constant 0 : index
    %c0_2 = arith.constant 0 : index
    %2 = vector.load %arg5[%c0_1, %c0_2] : memref<128x128xbf16, #tpu.memory_space<vmem>>, vector<128x128xbf16>
    %cst = arith.constant dense<0.000000e+00> : vector<128x128xf32>
    %3 = tpu.matmul %1, %2, %cst {dimension_numbers = #tpu.dot_dimension_numbers<[1], [0], [0], [1], [0, 0, 1, 1], [], []>} : vector<128x128xbf16>, vector<128x128xbf16>, vector<128x128xf32> -> vector<128x128xf32>
    %c0_3 = arith.constant 0 : index
    %c0_4 = arith.constant 0 : index
    %4 = vector.load %arg6[%c0_3, %c0_4] : memref<1x128xf32, #tpu.memory_space<vmem>>, vector<1x128xf32>
    %5 = vector.broadcast %4 : vector<1x128xf32> to vector<128x128xf32>
    %6 = arith.addf %3, %5 : vector<128x128xf32>
    %cst_5 = arith.constant 0.000000e+00 : f32
    %7 = vector.broadcast %cst_5 : f32 to vector<128x128xf32>
    %8 = arith.maximumf %6, %7 : vector<128x128xf32>
    %9 = arith.truncf %8 : vector<128x128xf32> to vector<128x128xbf16>
    %c0_6 = arith.constant 0 : index
    %c0_7 = arith.constant 0 : index
    %10 = vector.load %arg7[%c0_6, %c0_7] : memref<128x128xbf16, #tpu.memory_space<vmem>>, vector<128x128xbf16>
    %cst_8 = arith.constant dense<0.000000e+00> : vector<128x128xf32>
    %11 = tpu.matmul %9, %10, %cst_8 {dimension_numbers = #tpu.dot_dimension_numbers<[1], [0], [0], [1], [0, 0, 1, 1], [], []>} : vector<128x128xbf16>, vector<128x128xbf16>, vector<128x128xf32> -> vector<128x128xf32>
    %c0_9 = arith.constant 0 : index
    %c0_10 = arith.constant 0 : index
    %12 = vector.load %arg8[%c0_9, %c0_10] : memref<1x128xf32, #tpu.memory_space<vmem>>, vector<1x128xf32>
    %13 = vector.broadcast %12 : vector<1x128xf32> to vector<128x128xf32>
    %14 = arith.addf %11, %13 : vector<128x128xf32>
    %cst_11 = arith.constant 0.000000e+00 : f32
    %15 = vector.broadcast %cst_11 : f32 to vector<128x128xf32>
    %16 = arith.maximumf %14, %15 : vector<128x128xf32>
    %17 = arith.truncf %16 : vector<128x128xf32> to vector<128x128xbf16>
    %18 = vector.extract_strided_slice %17 {offsets = [0, 0], sizes = [128, 16], strides = [1, 1]} : vector<128x128xbf16> to vector<128x16xbf16>
    %19 = arith.extf %18 : vector<128x16xbf16> to vector<128x16xf32>
    %c0_12 = arith.constant 0 : index
    %c0_13 = arith.constant 0 : index
    %20 = vector.load %arg2[%c0_12, %c0_13] : memref<128x16xf32, #tpu.memory_space<vmem>>, vector<128x16xf32>
    %c0_14 = arith.constant 0 : index
    %c0_15 = arith.constant 0 : index
    %21 = vector.load %arg3[%c0_14, %c0_15] : memref<128x16xf32, #tpu.memory_space<vmem>>, vector<128x16xf32>
    %c0_16 = arith.constant 0 : index
    %c0_17 = arith.constant 0 : index
    %22 = vector.load %arg4[%c0_16, %c0_17] : memref<128x16xf32, #tpu.memory_space<vmem>>, vector<128x16xf32>
    %c0_18 = arith.constant 0 : index
    %c0_19 = arith.constant 0 : index
    %23 = vector.load %arg9[%c0_18, %c0_19] : memref<128x128xbf16, #tpu.memory_space<vmem>>, vector<128x128xbf16>
    %24 = vector.extract_strided_slice %23 {offsets = [0, 0], sizes = [16, 128], strides = [1, 1]} : vector<128x128xbf16> to vector<16x128xbf16>
    %cst_20 = arith.constant dense<0.000000e+00> : vector<128x128xf32>
    %25 = tpu.matmul %18, %24, %cst_20 {dimension_numbers = #tpu.dot_dimension_numbers<[1], [0], [0], [1], [0, 0, 1, 1], [], []>} : vector<128x16xbf16>, vector<16x128xbf16>, vector<128x128xf32> -> vector<128x128xf32>
    %c0_21 = arith.constant 0 : index
    %c0_22 = arith.constant 0 : index
    %26 = vector.load %arg10[%c0_21, %c0_22] : memref<1x128xf32, #tpu.memory_space<vmem>>, vector<1x128xf32>
    %27 = vector.broadcast %26 : vector<1x128xf32> to vector<128x128xf32>
    %28 = arith.addf %25, %27 : vector<128x128xf32>
    %29 = arith.extf %23 : vector<128x128xbf16> to vector<128x128xf32>
    %30 = arith.mulf %19, %19 : vector<128x16xf32>
    %cst_23 = arith.constant dense<0.000000e+00> : vector<128xf32>
    %31 = vector.multi_reduction <add>, %30, %cst_23 [1] : vector<128x16xf32> to vector<128xf32>
    %32 = vector.shape_cast %31 : vector<128xf32> to vector<128x1xf32>
    %33 = vector.extract_strided_slice %29 {offsets = [16, 0], sizes = [1, 128], strides = [1, 1]} : vector<128x128xf32> to vector<1x128xf32>
    %34 = vector.broadcast %32 : vector<128x1xf32> to vector<128x128xf32>
    %35 = vector.broadcast %33 : vector<1x128xf32> to vector<128x128xf32>
    %36 = arith.mulf %34, %35 : vector<128x128xf32>
    %37 = arith.addf %28, %36 : vector<128x128xf32>
    %38 = arith.mulf %20, %19 : vector<128x16xf32>
    %cst_24 = arith.constant dense<0.000000e+00> : vector<128xf32>
    %39 = vector.multi_reduction <add>, %38, %cst_24 [1] : vector<128x16xf32> to vector<128xf32>
    %40 = vector.shape_cast %39 : vector<128xf32> to vector<128x1xf32>
    %41 = vector.extract_strided_slice %29 {offsets = [17, 0], sizes = [1, 128], strides = [1, 1]} : vector<128x128xf32> to vector<1x128xf32>
    %42 = vector.broadcast %40 : vector<128x1xf32> to vector<128x128xf32>
    %43 = vector.broadcast %41 : vector<1x128xf32> to vector<128x128xf32>
    %44 = arith.mulf %42, %43 : vector<128x128xf32>
    %45 = arith.addf %37, %44 : vector<128x128xf32>
    %46 = arith.mulf %20, %20 : vector<128x16xf32>
    %cst_25 = arith.constant dense<0.000000e+00> : vector<128xf32>
    %47 = vector.multi_reduction <add>, %46, %cst_25 [1] : vector<128x16xf32> to vector<128xf32>
    %48 = vector.shape_cast %47 : vector<128xf32> to vector<128x1xf32>
    %49 = vector.extract_strided_slice %29 {offsets = [18, 0], sizes = [1, 128], strides = [1, 1]} : vector<128x128xf32> to vector<1x128xf32>
    %50 = vector.broadcast %48 : vector<128x1xf32> to vector<128x128xf32>
    %51 = vector.broadcast %49 : vector<1x128xf32> to vector<128x128xf32>
    %52 = arith.mulf %50, %51 : vector<128x128xf32>
    %53 = arith.addf %45, %52 : vector<128x128xf32>
    %54 = arith.mulf %21, %19 : vector<128x16xf32>
    %cst_26 = arith.constant dense<0.000000e+00> : vector<128xf32>
    %55 = vector.multi_reduction <add>, %54, %cst_26 [1] : vector<128x16xf32> to vector<128xf32>
    %56 = vector.shape_cast %55 : vector<128xf32> to vector<128x1xf32>
    %57 = vector.extract_strided_slice %29 {offsets = [19, 0], sizes = [1, 128], strides = [1, 1]} : vector<128x128xf32> to vector<1x128xf32>
    %58 = vector.broadcast %56 : vector<128x1xf32> to vector<128x128xf32>
    %59 = vector.broadcast %57 : vector<1x128xf32> to vector<128x128xf32>
    %60 = arith.mulf %58, %59 : vector<128x128xf32>
    %61 = arith.addf %53, %60 : vector<128x128xf32>
    %62 = arith.mulf %21, %20 : vector<128x16xf32>
    %cst_27 = arith.constant dense<0.000000e+00> : vector<128xf32>
    %63 = vector.multi_reduction <add>, %62, %cst_27 [1] : vector<128x16xf32> to vector<128xf32>
    %64 = vector.shape_cast %63 : vector<128xf32> to vector<128x1xf32>
    %65 = vector.extract_strided_slice %29 {offsets = [20, 0], sizes = [1, 128], strides = [1, 1]} : vector<128x128xf32> to vector<1x128xf32>
    %66 = vector.broadcast %64 : vector<128x1xf32> to vector<128x128xf32>
    %67 = vector.broadcast %65 : vector<1x128xf32> to vector<128x128xf32>
    %68 = arith.mulf %66, %67 : vector<128x128xf32>
    %69 = arith.addf %61, %68 : vector<128x128xf32>
    %70 = arith.mulf %21, %21 : vector<128x16xf32>
    %cst_28 = arith.constant dense<0.000000e+00> : vector<128xf32>
    %71 = vector.multi_reduction <add>, %70, %cst_28 [1] : vector<128x16xf32> to vector<128xf32>
    %72 = vector.shape_cast %71 : vector<128xf32> to vector<128x1xf32>
    %73 = vector.extract_strided_slice %29 {offsets = [21, 0], sizes = [1, 128], strides = [1, 1]} : vector<128x128xf32> to vector<1x128xf32>
    %74 = vector.broadcast %72 : vector<128x1xf32> to vector<128x128xf32>
    %75 = vector.broadcast %73 : vector<1x128xf32> to vector<128x128xf32>
    %76 = arith.mulf %74, %75 : vector<128x128xf32>
    %77 = arith.addf %69, %76 : vector<128x128xf32>
    %78 = arith.mulf %22, %19 : vector<128x16xf32>
    %cst_29 = arith.constant dense<0.000000e+00> : vector<128xf32>
    %79 = vector.multi_reduction <add>, %78, %cst_29 [1] : vector<128x16xf32> to vector<128xf32>
    %80 = vector.shape_cast %79 : vector<128xf32> to vector<128x1xf32>
    %81 = vector.extract_strided_slice %29 {offsets = [22, 0], sizes = [1, 128], strides = [1, 1]} : vector<128x128xf32> to vector<1x128xf32>
    %82 = vector.broadcast %80 : vector<128x1xf32> to vector<128x128xf32>
    %83 = vector.broadcast %81 : vector<1x128xf32> to vector<128x128xf32>
    %84 = arith.mulf %82, %83 : vector<128x128xf32>
    %85 = arith.addf %77, %84 : vector<128x128xf32>
    %86 = arith.mulf %22, %20 : vector<128x16xf32>
    %cst_30 = arith.constant dense<0.000000e+00> : vector<128xf32>
    %87 = vector.multi_reduction <add>, %86, %cst_30 [1] : vector<128x16xf32> to vector<128xf32>
    %88 = vector.shape_cast %87 : vector<128xf32> to vector<128x1xf32>
    %89 = vector.extract_strided_slice %29 {offsets = [23, 0], sizes = [1, 128], strides = [1, 1]} : vector<128x128xf32> to vector<1x128xf32>
    %90 = vector.broadcast %88 : vector<128x1xf32> to vector<128x128xf32>
    %91 = vector.broadcast %89 : vector<1x128xf32> to vector<128x128xf32>
    %92 = arith.mulf %90, %91 : vector<128x128xf32>
    %93 = arith.addf %85, %92 : vector<128x128xf32>
    %94 = arith.mulf %22, %21 : vector<128x16xf32>
    %cst_31 = arith.constant dense<0.000000e+00> : vector<128xf32>
    %95 = vector.multi_reduction <add>, %94, %cst_31 [1] : vector<128x16xf32> to vector<128xf32>
    %96 = vector.shape_cast %95 : vector<128xf32> to vector<128x1xf32>
    %97 = vector.extract_strided_slice %29 {offsets = [24, 0], sizes = [1, 128], strides = [1, 1]} : vector<128x128xf32> to vector<1x128xf32>
    %98 = vector.broadcast %96 : vector<128x1xf32> to vector<128x128xf32>
    %99 = vector.broadcast %97 : vector<1x128xf32> to vector<128x128xf32>
    %100 = arith.mulf %98, %99 : vector<128x128xf32>
    %101 = arith.addf %93, %100 : vector<128x128xf32>
    %102 = arith.mulf %22, %22 : vector<128x16xf32>
    %cst_32 = arith.constant dense<0.000000e+00> : vector<128xf32>
    %103 = vector.multi_reduction <add>, %102, %cst_32 [1] : vector<128x16xf32> to vector<128xf32>
    %104 = vector.shape_cast %103 : vector<128xf32> to vector<128x1xf32>
    %105 = vector.extract_strided_slice %29 {offsets = [25, 0], sizes = [1, 128], strides = [1, 1]} : vector<128x128xf32> to vector<1x128xf32>
    %106 = vector.broadcast %104 : vector<128x1xf32> to vector<128x128xf32>
    %107 = vector.broadcast %105 : vector<1x128xf32> to vector<128x128xf32>
    %108 = arith.mulf %106, %107 : vector<128x128xf32>
    %109 = arith.addf %101, %108 : vector<128x128xf32>
    %cst_33 = arith.constant 0.000000e+00 : f32
    %110 = vector.broadcast %cst_33 : f32 to vector<128x128xf32>
    %111 = arith.maximumf %109, %110 : vector<128x128xf32>
    %112 = arith.truncf %111 : vector<128x128xf32> to vector<128x128xbf16>
    %c0_34 = arith.constant 0 : index
    %c0_35 = arith.constant 0 : index
    %113 = vector.load %arg11[%c0_34, %c0_35] : memref<128x128xbf16, #tpu.memory_space<vmem>>, vector<128x128xbf16>
    %cst_36 = arith.constant dense<0.000000e+00> : vector<128x128xf32>
    %114 = tpu.matmul %112, %113, %cst_36 {dimension_numbers = #tpu.dot_dimension_numbers<[1], [0], [0], [1], [0, 0, 1, 1], [], []>} : vector<128x128xbf16>, vector<128x128xbf16>, vector<128x128xf32> -> vector<128x128xf32>
    %c0_37 = arith.constant 0 : index
    %c0_38 = arith.constant 0 : index
    %115 = vector.load %arg12[%c0_37, %c0_38] : memref<1x128xf32, #tpu.memory_space<vmem>>, vector<1x128xf32>
    %116 = vector.broadcast %115 : vector<1x128xf32> to vector<128x128xf32>
    %117 = arith.addf %114, %116 : vector<128x128xf32>
    %118 = arith.negf %117 : vector<128x128xf32>
    %119 = math.exp %118 : vector<128x128xf32>
    %cst_39 = arith.constant 1.000000e+00 : f32
    %120 = vector.broadcast %cst_39 : f32 to vector<128x128xf32>
    %121 = arith.addf %120, %119 : vector<128x128xf32>
    %122 = arith.divf %120, %121 : vector<128x128xf32>
    %c0_40 = arith.constant 0 : index
    %c0_41 = arith.constant 0 : index
    %123 = vector.load %arg13[%c0_40, %c0_41] : memref<128x128xf32, #tpu.memory_space<vmem>>, vector<128x128xf32>
    tpu.vector_store %arg13[%c0_40, %c0_41], %122 {strides = array<i32>} : memref<128x128xf32, #tpu.memory_space<vmem>>, vector<128x128xf32>,
    return
  }
  func.func @transform_0(%arg0: i32) -> (i32, i32) {
    %c0_i32 = arith.constant 0 : i32
    %c0_i32_0 = arith.constant 0 : i32
    return %arg0, %c0_i32 : i32, i32
  }
  func.func @transform_1(%arg0: i32) -> (i32, i32) {
    %c0_i32 = arith.constant 0 : i32
    %c0_i32_0 = arith.constant 0 : i32
    return %arg0, %c0_i32 : i32, i32
  }
  func.func @transform_2(%arg0: i32) -> (i32, i32) {
    %c0_i32 = arith.constant 0 : i32
    %c0_i32_0 = arith.constant 0 : i32
    return %arg0, %c0_i32 : i32, i32
  }
  func.func @transform_3(%arg0: i32) -> (i32, i32) {
    %c0_i32 = arith.constant 0 : i32
    %c0_i32_0 = arith.constant 0 : i32
    return %arg0, %c0_i32 : i32, i32
  }
  func.func @transform_4(%arg0: i32) -> (i32, i32) {
    %c0_i32 = arith.constant 0 : i32
    %c0_i32_0 = arith.constant 0 : i32
    %c0_i32_1 = arith.constant 0 : i32
    return %c0_i32, %c0_i32_0 : i32, i32
  }
  func.func @transform_5(%arg0: i32) -> (i32, i32) {
    %c0_i32 = arith.constant 0 : i32
    %c0_i32_0 = arith.constant 0 : i32
    %c0_i32_1 = arith.constant 0 : i32
    return %c0_i32, %c0_i32_0 : i32, i32
  }
  func.func @transform_6(%arg0: i32) -> (i32, i32) {
    %c0_i32 = arith.constant 0 : i32
    %c0_i32_0 = arith.constant 0 : i32
    %c0_i32_1 = arith.constant 0 : i32
    return %c0_i32, %c0_i32_0 : i32, i32
  }
  func.func @transform_7(%arg0: i32) -> (i32, i32) {
    %c0_i32 = arith.constant 0 : i32
    %c0_i32_0 = arith.constant 0 : i32
    %c0_i32_1 = arith.constant 0 : i32
    return %c0_i32, %c0_i32_0 : i32, i32
  }
  func.func @transform_8(%arg0: i32) -> (i32, i32) {
    %c0_i32 = arith.constant 0 : i32
    %c0_i32_0 = arith.constant 0 : i32
    %c0_i32_1 = arith.constant 0 : i32
    return %c0_i32, %c0_i32_0 : i32, i32
  }
  func.func @transform_9(%arg0: i32) -> (i32, i32) {
    %c0_i32 = arith.constant 0 : i32
    %c0_i32_0 = arith.constant 0 : i32
    %c0_i32_1 = arith.constant 0 : i32
    return %c0_i32, %c0_i32_0 : i32, i32
  }
  func.func @transform_10(%arg0: i32) -> (i32, i32) {
    %c0_i32 = arith.constant 0 : i32
    %c0_i32_0 = arith.constant 0 : i32
    %c0_i32_1 = arith.constant 0 : i32
    return %c0_i32, %c0_i32_0 : i32, i32
  }
  func.func @transform_11(%arg0: i32) -> (i32, i32) {
    %c0_i32 = arith.constant 0 : i32
    %c0_i32_0 = arith.constant 0 : i32
    %c0_i32_1 = arith.constant 0 : i32
    return %c0_i32, %c0_i32_0 : i32, i32
  }
  func.func @transform_12(%arg0: i32) -> (i32, i32) {
    %c0_i32 = arith.constant 0 : i32
    %c0_i32_0 = arith.constant 0 : i32
    return %arg0, %c0_i32 : i32, i32
  }
}

</mosaic_0001>

<bundles_post_ra>
// kernel: dlrm_forward.1
= control target key start
LH: loop header
LB: loop body
LE: loop exit
PB: predicated region body
PF: predicated region fallthrough
CT: control target
= control target key end

     0   :  { %s2923_s21 = smov 0   ;;  %s4660_s0 = inlined_call_operand.vmem [shape: f32[256,128], index: 0, kind: input, shape index: {}]   ;;  %s4661_s1 = inlined_call_operand.vmem [shape: f32[256,16], index: 1, kind: input, shape index: {}]   ;;  %s4662_s2 = inlined_call_operand.vmem [shape: f32[256,16], index: 2, kind: input, shape index: {}]   ;;  %s4663_s3 = inlined_call_operand.vmem [shape: f32[256,16], index: 3, kind: input, shape index: {}]   ;;  %s4664_s4 = inlined_call_operand.vmem [shape: bf16[128,128], index: 4, kind: input, shape index: {}]   ;;  %s4665_s5 = inlined_call_operand.vmem [shape: f32[1,128], index: 5, kind: input, shape index: {}]   ;;  %s4666_s6 = inlined_call_operand.vmem [shape: bf16[128,128], index: 6, kind: input, shape index: {}]   ;;  %s4667_s7 = inlined_call_operand.vmem [shape: f32[1,128], index: 7, kind: input, shape index: {}]   ;;  %s4668_s8 = inlined_call_operand.vmem [shape: bf16[128,128], index: 8, kind: input, shape index: {}]   ;;  %s4669_s9 = inlined_call_operand.vmem [shape: f32[1,128], index: 9, kind: input, shape index: {}]   ;;  %s4670_s10 = inlined_call_operand.vmem [shape: bf16[128,128], index: 10, kind: input, shape index: {}]   ;;  %s4671_s11 = inlined_call_operand.vmem [shape: f32[1,128], index: 11, kind: input, shape index: {}]   ;;  %s4672_s12 = inlined_call_operand.vmem [shape: f32[256,128], index: 12, kind: output, shape index: {}]  }
   0x1 LB: > { %s2493_s22 = sadd.s32 4294967295, %s2856_s21   ;;  %p2497_p0 = scmp.ge.s32.totalorder %s2856_s21, 1  ;;  %s2856_s21 = sphi %s2923_s21, %s22_s21  }
   0x2   : > { %p396_p1 = scmp.lt.s32.totalorder %s2856_s21, 3 }
   0x4   : > { %p397_p2 = pnand %p2497_p0, %p396_p1 }
   0x6   : > { %400 = sbr.rel (%p397_p2) target bundleno = 1030 (0x406), region = 68 }
   0xd   : > { %v2747_v0 = vld [vmem:[%s4664_s4] sm:$0xff]   ;;  %s2498_s25 = sshll.u32 %s2493_s22, 4  ;;  %v2748_v1 = vld [vmem:[%s4664_s4 + $0x8] sm:$0xff]   ;;  %v2749_v2 = vld [vmem:[%s4664_s4 + $0x10] sm:$0xff]   ;;  %vm973_vm0 = vcmask 130048  }
   0xe   : > { %p454_p3 = scmp.lt.s32.totalorder %s2498_s25, 31  ;;  %2625 = vmatprep.subr.bf16.mxu0 %v2747_v0  ;;  %v2750_v3 = vld [vmem:[%s4664_s4 + $0x18] sm:$0xff]   ;;  %v2751_v7 = vld [vmem:[%s4664_s4 + $0x20] sm:$0xff]   ;;  %v2756_v9 = vld [vmem:[%s4666_s6 + $0x8] sm:$0xff]  }
   0xf   : > { %2626 = vmatpush3.bf16.msra.mxu0 %v2747_v0  ;;  %v2755_v8 = vld [vmem:[%s4666_s6] sm:$0xff]   ;;  %v2752_v10 = vld [vmem:[%s4664_s4 + $0x28] sm:$0xff]   ;;  %v2757_v11 = vld [vmem:[%s4666_s6 + $0x10] sm:$0xff]  }
  0x10   : > { %s4969_s25 = smov (!%p454_p3, %s2498_s25), 31  ;;  %2627 = vmatprep.subr.bf16.mxu0 %v2748_v1  ;;  %2657 = vmatprep.subr.bf16.mxu1 %v2755_v8  ;;  %v2753_v12 = vld [vmem:[%s4664_s4 + $0x30] sm:$0xff]   ;;  %v2758_v13 = vld [vmem:[%s4666_s6 + $0x18] sm:$0xff]   ;;  %v2759_v15 = vld [vmem:[%s4666_s6 + $0x20] sm:$0xff]  }
  0x11   : > { %s2940_s30 = sshll.u32 %s4969_s25, 3  ;;  %2658 = vmatpush3.bf16.msra.mxu1 %v2755_v8  ;;  %v2754_v14 = vld [vmem:[%s4664_s4 + $0x38] sm:$0xff]   ;;  %v2760_v21 = vld [vmem:[%s4666_s6 + $0x28] sm:$0xff]   ;;  %v2761_v38 = vld [vmem:[%s4666_s6 + $0x30] sm:$0xff]  }
  0x12   : > { %s2946_s15 = scalar_lea.vmem %s4660_s0, %s2940_s30  ;;  %2659 = vmatprep.subr.bf16.mxu1 %v2756_v9  ;;  %v2762_v39 = vld [vmem:[%s4666_s6 + $0x38] sm:$0xff]   ;;  %s3007_s13 = scalar_lea.vmem %s4661_s1, %s2940_s30 }
  0x13   : > { %2628 = vmatpush3.bf16.msra.mxu0 %v2748_v1  ;;  %v484_v4 = vld [vmem:[%s2946_s15] sm:$0xff]  ;;  %v485_v5 = vld [vmem:[%s2946_s15 + $0x8] sm:$0xff]  ;;  %v486_v16 = vld [vmem:[%s2946_s15 + $0x10] sm:$0xff]  ;;  %s3013_s16 = scalar_lea.vmem %s4662_s2, %s2940_s30  ;;  %s3085_s19 = scalar_lea.vmem %s4663_s3, %s2940_s30 }
  0x14   : > { %2629 = vmatprep.subr.bf16.mxu0 %v2749_v2  ;;  %v500_v6 = vpack.c.bf16 %v485_v5, %v484_v4  ;;  %v487_v17 = vld [vmem:[%s2946_s15 + $0x18] sm:$0xff]  ;;  %v488_v18 = vld [vmem:[%s2946_s15 + $0x20] sm:$0xff]  ;;  %v489_v19 = vld [vmem:[%s2946_s15 + $0x28] sm:$0xff]  ;;  %s4635_s18 = scalar_lea.vmem %s4672_s12, %s2940_s30 }
  0x15   : > { %2660 = vmatpush3.bf16.msra.mxu1 %v2756_v9  ;;  %v501_v20 = vpack.c.bf16 %v487_v17, %v486_v16  ;;  %v502_v22 = vpack.c.bf16 %v489_v19, %v488_v18  ;;  %v490_v23 = vld [vmem:[%s2946_s15 + $0x30] sm:$0xff]  ;;  %v491_v24 = vld [vmem:[%s2946_s15 + $0x38] sm:$0xff]  ;;  %v492_v25 = vld [vmem:[%s2946_s15 + $0x40] sm:$0xff] }
  0x16   : > { %2641 = vmatprep.mubr.bf16.mxu0 %v500_v6  ;;  %2661 = vmatprep.subr.bf16.mxu1 %v2757_v11  ;;  %v493_v26 = vld [vmem:[%s2946_s15 + $0x48] sm:$0xff]  ;;  %v503_v27 = vpack.c.bf16 %v491_v24, %v490_v23  ;;  %v494_v29 = vld [vmem:[%s2946_s15 + $0x50] sm:$0xff]  ;;  %v495_v30 = vld [vmem:[%s2946_s15 + $0x58] sm:$0xff] }
  0x17   : > { %2630 = vmatpush3.bf16.msra.mxu0 %v2749_v2  ;;  %v504_v28 = vpack.c.bf16 %v493_v26, %v492_v25  ;;  %v496_v31 = vld [vmem:[%s2946_s15 + $0x60] sm:$0xff]  ;;  %v497_v32 = vld [vmem:[%s2946_s15 + $0x68] sm:$0xff]  ;;  %v505_v33 = vpack.c.bf16 %v495_v30, %v494_v29  ;;  %v498_v35 = vld [vmem:[%s2946_s15 + $0x70] sm:$0xff] }
  0x18   : > { %2631 = vmatprep.subr.bf16.mxu0 %v2750_v3  ;;  %v506_v34 = vpack.c.bf16 %v497_v32, %v496_v31  ;;  %v499_v36 = vld [vmem:[%s2946_s15 + $0x78] sm:$0xff]  ;;  %v909_v40 = vld [vmem:[%s3007_s13 + $0x8] sm:$0xff]  ;;  %v908_v41 = vld [vmem:[%s3007_s13] sm:$0xff] }
  0x19   : > { %2662 = vmatpush3.bf16.msra.mxu1 %v2757_v11  ;;  %v507_v37 = vpack.c.bf16 %v499_v36, %v498_v35  ;;  %v3018_v42 = vld [vmem:[%s3007_s13 + $0x18] sm:$0xff]  ;;  %v1298_v43 = vmul.f32 %v909_v40, %v909_v40  ;;  %v1297_v44 = vmul.f32 %v908_v41, %v908_v41  ;;  %v3023_v46 = vld [vmem:[%s3007_s13 + $0x10] sm:$0xff]  ;;  %v3028_v48 = vld [vmem:[%s3013_s16 + $0x8] sm:$0xff] }
  0x1a   : > { %2663 = vmatprep.subr.bf16.mxu1 %v2758_v13  ;;  %v1300_v45 = vmul.f32 %v3018_v42, %v3018_v42  ;;  %v1299_v47 = vmul.f32 %v3023_v46, %v3023_v46  ;;  %v3031_v49 = vld [vmem:[%s3013_s16] sm:$0xff]  ;;  %v1498_v54 = vmul.f32 %v3028_v48, %v909_v40  ;;  %v3040_v56 = vld [vmem:[%s3013_s16 + $0x18] sm:$0xff]  ;;  %v3043_v57 = vld [vmem:[%s3013_s16 + $0x10] sm:$0xff]  ;;  %v1598_v0 = vmul.f32 %v3028_v48, %v3028_v48 }
  0x1b   : > { %2632 = vmatpush3.bf16.msra.mxu0 %v2750_v3  ;;  %v1316_v50 = vsel %vm973_vm0, %v1298_v43, 0.0  ;;  %v1313_v51 = vsel %vm973_vm0, %v1297_v44, 0.0  ;;  %v1497_v55 = vmul.f32 %v3031_v49, %v908_v41  ;;  %v1500_v60 = vmul.f32 %v3040_v56, %v3018_v42  ;;  %v3064_v6 = vld [vmem:[%s3007_s13 + $0x28] sm:$0xff]  ;;  %v3097_v19 = vld [vmem:[%s3085_s19] sm:$0xff]  ;;  %v3104_v24 = vld [vmem:[%s3085_s19 + $0x18] sm:$0xff] }
  0x1c   : > { %2633 = vmatprep.subr.bf16.mxu0 %v2751_v7  ;;  %1317 = vadd.xlane.f32.xlu1 %v1316_v50  ;;  %v1322_v52 = vsel %vm973_vm0, %v1300_v45, 0.0  ;;  %v1319_v53 = vsel %vm973_vm0, %v1299_v47, 0.0  ;;  %v1516_v58 = vsel %vm973_vm0, %v1498_v54, 0.0  ;;  %v1499_v61 = vmul.f32 %v3043_v57, %v3023_v46  ;;  %v3094_v18 = vld [vmem:[%s3085_s19 + $0x8] sm:$0xff]  ;;  %v3107_v25 = vld [vmem:[%s3085_s19 + $0x10] sm:$0xff]  ;;  %v3119_v31 = vld [vmem:[%s3013_s16 + $0x20] sm:$0xff] }
  0x1d   : > { %2664 = vmatpush3.bf16.msra.mxu1 %v2758_v13  ;;  %1314 = vadd.xlane.f32.xlu0 %v1313_v51  ;;  %v1513_v59 = vsel %vm973_vm0, %v1497_v55, 0.0  ;;  %v1522_v62 = vsel %vm973_vm0, %v1500_v60, 0.0  ;;  %v1597_v1 = vmul.f32 %v3031_v49, %v3031_v49  ;;  %v1616_v2 = vsel %vm973_vm0, %v1598_v0, 0.0  ;;  %v3079_v13 = vld [vmem:[%s3007_s13 + $0x30] sm:$0xff]  ;;  %v3116_v30 = vld [vmem:[%s3013_s16 + $0x28] sm:$0xff] }
  0x1e   : > { %2665 = vmatprep.subr.bf16.mxu1 %v2759_v15  ;;  %v1519_v63 = vsel %vm973_vm0, %v1499_v61, 0.0  ;;  %v1600_v4 = vmul.f32 %v3040_v56, %v3040_v56  ;;  %v1599_v5 = vmul.f32 %v3043_v57, %v3043_v57  ;;  %v1303_v17 = vmul.f32 %v3079_v13, %v3079_v13 }
  0x1f   : > { %2634 = vmatpush3.bf16.msra.mxu0 %v2751_v7  ;;  %v1613_v3 = vsel %vm973_vm0, %v1597_v1, 0.0  ;;  %v3067_v7 = vld [vmem:[%s3007_s13 + $0x20] sm:$0xff]  ;;  %v1797_v23 = vmul.f32 %v3097_v19, %v908_v41  ;;  %v1799_v29 = vmul.f32 %v3107_v25, %v3023_v46  ;;  %v3137_v41 = vld [vmem:[%s3013_s16 + $0x30] sm:$0xff]  ;;  %v1900_v50 = vmul.f32 %v3104_v24, %v3040_v56 }
  0x20   : > { %2635 = vmatprep.subr.bf16.mxu0 %v2752_v10  ;;  %1323 = vadd.xlane.f32.xlu1 %v1322_v52  ;;  %v1622_v8 = vsel %vm973_vm0, %v1600_v4, 0.0  ;;  %v1619_v9 = vsel %vm973_vm0, %v1599_v5, 0.0  ;;  %v1301_v11 = vmul.f32 %v3067_v7, %v3067_v7  ;;  %v1501_v35 = vmul.f32 %v3119_v31, %v3067_v7 }
  0x21   : > { %2666 = vmatpush3.bf16.msra.mxu1 %v2759_v15  ;;  %1320 = vadd.xlane.f32.xlu0 %v1319_v53  ;;  %v1503_v47 = vmul.f32 %v3137_v41, %v3079_v13  ;;  %v1899_v51 = vmul.f32 %v3107_v25, %v3043_v57  ;;  %v1922_v52 = vsel %vm973_vm0, %v1900_v50, 0.0  ;;  %v1602_v54 = vmul.f32 %v3116_v30, %v3116_v30  ;;  %v3242_v50 = vld [vmem:[%s3013_s16 + $0x58] sm:$0xff] }
  0x22   : > { %2667 = vmatprep.subr.bf16.mxu1 %v2760_v21  ;;  %v1325_v15 = vsel %vm973_vm0, %v1301_v11, 0.0  ;;  %v1601_v55 = vmul.f32 %v3119_v31, %v3119_v31  ;;  %v1998_v60 = vmul.f32 %v3094_v18, %v3094_v18  ;;  %v1997_v61 = vmul.f32 %v3097_v19, %v3097_v19 }
  0x23   : > { %2636 = vmatpush3.bf16.msra.mxu0 %v2752_v10  ;;  %v1302_v10 = vmul.f32 %v3064_v6, %v3064_v6  ;;  %v1919_v53 = vsel %vm973_vm0, %v1899_v51, 0.0  ;;  %v1603_v1 = vmul.f32 %v3137_v41, %v3137_v41  ;;  %v2000_v4 = vmul.f32 %v3104_v24, %v3104_v24  ;;  %v3247_v51 = vld [vmem:[%s4665_s5] ss:$0 sm:$0xff] }
  0x24   : > { %2637 = vmatprep.subr.bf16.mxu0 %v2753_v12  ;;  %1517 = vadd.xlane.f32.xlu1 %v1516_v58  ;;  %v1628_v58 = vsel %vm973_vm0, %v1602_v54, 0.0  ;;  %v1999_v5 = vmul.f32 %v3107_v25, %v3107_v25 }
  0x25   : > { %2668 = vmatpush3.bf16.msra.mxu1 %v2760_v21  ;;  %1514 = vadd.xlane.f32.xlu0 %v1513_v59  ;;  %v1331_v21 = vsel %vm973_vm0, %v1303_v17, 0.0  ;;  %v1625_v59 = vsel %vm973_vm0, %v1601_v55, 0.0  ;;  %v3191_v17 = vld [vmem:[%s3007_s13 + $0x50] sm:$0xff] }
  0x26   : > { %2669 = vmatprep.subr.bf16.mxu1 %v2761_v38  ;;  %v2019_v11 = vsel %vm973_vm0, %v1999_v5, 0.0 }
  0x27   : > { %2638 = vmatpush3.bf16.msra.mxu0 %v2753_v12  ;;  %v3076_v12 = vld [vmem:[%s3007_s13 + $0x38] sm:$0xff] }
  0x28   : > { %2639 = vmatprep.subr.bf16.mxu0 %v2754_v14  ;;  %1523 = vadd.xlane.f32.xlu1 %v1522_v62  ;;  %v1304_v16 = vmul.f32 %v3076_v12, %v3076_v12  ;;  %v2016_v62 = vsel %vm973_vm0, %v1998_v60, 0.0 }
  0x29   : > { %2670 = vmatpush3.bf16.msra.mxu1 %v2761_v38  ;;  %1520 = vadd.xlane.f32.xlu0 %v1519_v63  ;;  %v1898_v38 = vmul.f32 %v3094_v18, %v3028_v48  ;;  %v2013_v63 = vsel %vm973_vm0, %v1997_v61, 0.0 }
  0x2a   : > { %2671 = vmatprep.subr.bf16.mxu1 %v2762_v39 }
  0x2b   : > { %2640 = vmatpush3.bf16.msra.mxu0 %v2754_v14  ;;  %v1328_v14 = vsel %vm973_vm0, %v1302_v10, 0.0  ;;  %v1916_v43 = vsel %vm973_vm0, %v1898_v38, 0.0  ;;  %v2022_v10 = vsel %vm973_vm0, %v2000_v4, 0.0 }
  0x2c   : > { %1617 = vadd.xlane.f32.xlu1 %v1616_v2 }
  0x2d   : > { %2672 = vmatpush3.bf16.msra.mxu1 %v2762_v39  ;;  %1614 = vadd.xlane.f32.xlu0 %v1613_v3  ;;  %v1897_v39 = vmul.f32 %v3097_v19, %v3031_v49  ;;  %v1531_v49 = vsel %vm973_vm0, %v1503_v47, 0.0  ;;  %v1631_v3 = vsel %vm973_vm0, %v1603_v1, 0.0 }
  0x2e   : > { %2642 = vmatmul.mubr.bf16.vlgmr.msra.gmra.mrb[0].mxu0 %v501_v20  ;;  %v1334_v20 = vsel %vm973_vm0, %v1304_v16, 0.0  ;;  %v3188_v16 = vld [vmem:[%s3007_s13 + $0x58] sm:$0xff] }
  0x2f   : > { %2645 = vmatprep.mubr.bf16.mxu0 %v502_v22  ;;  %v1798_v22 = vmul.f32 %v3094_v18, %v909_v40  ;;  %v3134_v40 = vld [vmem:[%s3013_s16 + $0x38] sm:$0xff]  ;;  %v1913_v44 = vsel %vm973_vm0, %v1897_v39, 0.0  ;;  %v3224_v39 = vld [vmem:[%s3013_s16 + $0x48] sm:$0xff]  ;;  %v1508_v54 = vmul.f32 %v3242_v50, %v3188_v16 }
  0x30   : > { %1623 = vadd.xlane.f32.xlu1 %v1622_v8  ;;  %v1504_v45 = vmul.f32 %v3134_v40, %v3076_v12  ;;  %v1604_v0 = vmul.f32 %v3134_v40, %v3134_v40  ;;  %v3176_v8 = vld [vmem:[%s3007_s13 + $0x48] sm:$0xff] }
  0x31   : > { %1620 = vadd.xlane.f32.xlu0 %v1619_v9  ;;  %v1816_v26 = vsel %vm973_vm0, %v1798_v22, 0.0  ;;  %v3179_v9 = vld [vmem:[%s3007_s13 + $0x40] sm:$0xff]  ;;  %v1308_v22 = vmul.f32 %v3188_v16, %v3188_v16  ;;  %v1546_v1 = vsel %vm973_vm0, %v1508_v54, 0.0 }
  0x32   : > { %v1534_v48 = vsel %vm973_vm0, %v1504_v45, 0.0  ;;  %v1634_v2 = vsel %vm973_vm0, %v1604_v0, 0.0  ;;  %v1506_v45 = vmul.f32 %v3224_v39, %v3176_v8 }
  0x34   : > { %1329 = vadd.xlane.f32.xlu1 %v1328_v14  ;;  %v1306_v14 = vmul.f32 %v3176_v8, %v3176_v8 }
  0x35   : > { %1326 = vadd.xlane.f32.xlu0 %v1325_v15  ;;  %v1305_v15 = vmul.f32 %v3179_v9, %v3179_v9 }
  0x36   : > { %2646 = vmatmul.mubr.bf16.gmra.mrb[4].mxu0 %v503_v27  ;;  %v1813_v27 = vsel %vm973_vm0, %v1797_v23, 0.0  ;;  %v1307_v23 = vmul.f32 %v3191_v17, %v3191_v17 }
  0x37   : > { %2649 = vmatprep.mubr.bf16.mxu0 %v504_v28  ;;  %v1800_v28 = vmul.f32 %v3104_v24, %v3018_v42 }
  0x38   : > { %1335 = vadd.xlane.f32.xlu1 %v1334_v20  ;;  %v1340_v20 = vsel %vm973_vm0, %v1306_v14, 0.0 }
  0x39   : > { %1332 = vadd.xlane.f32.xlu0 %v1331_v21  ;;  %v1822_v32 = vsel %vm973_vm0, %v1800_v28, 0.0  ;;  %v1337_v21 = vsel %vm973_vm0, %v1305_v15, 0.0  ;;  %v1346_v28 = vsel %vm973_vm0, %v1308_v22, 0.0  ;;  %v1606_v22 = vmul.f32 %v3224_v39, %v3224_v39 }
  0x3c   : > { %1817 = vadd.xlane.f32.xlu1 %v1816_v26  ;;  %v3200_v26 = vld [vmem:[%s3085_s19 + $0x28] sm:$0xff] }
  0x3d   : > { %1814 = vadd.xlane.f32.xlu0 %v1813_v27  ;;  %v3203_v27 = vld [vmem:[%s3085_s19 + $0x20] sm:$0xff] }
  0x3e   : > { %2650 = vmatmul.mubr.bf16.gmra.mrb[8].mxu0 %v505_v33  ;;  %v1819_v33 = vsel %vm973_vm0, %v1799_v29, 0.0  ;;  %v1343_v29 = vsel %vm973_vm0, %v1307_v23, 0.0 }
  0x3f   : > { %2653 = vmatprep.mubr.bf16.mxu0 %v506_v34  ;;  %v1502_v34 = vmul.f32 %v3116_v30, %v3064_v6 }
  0x40   : > { %1823 = vadd.xlane.f32.xlu1 %v1822_v32  ;;  %v1802_v32 = vmul.f32 %v3200_v26, %v3064_v6 }
  0x41   : > { %1820 = vadd.xlane.f32.xlu0 %v1819_v33  ;;  %v1528_v36 = vsel %vm973_vm0, %v1502_v34, 0.0  ;;  %v1801_v33 = vmul.f32 %v3203_v27, %v3067_v7  ;;  %v3212_v34 = vld [vmem:[%s3085_s19 + $0x38] sm:$0xff]  ;;  %v3227_v7 = vld [vmem:[%s3013_s16 + $0x40] sm:$0xff] }
  0x42   : > { %v1804_v38 = vmul.f32 %v3212_v34, %v3076_v12  ;;  %v1505_v12 = vmul.f32 %v3227_v7, %v3179_v9 }
  0x44   : > { %1529 = vadd.xlane.f32.xlu1 %v1528_v36  ;;  %v1828_v36 = vsel %vm973_vm0, %v1802_v32, 0.0  ;;  %v1537_v47 = vsel %vm973_vm0, %v1505_v12, 0.0  ;;  %v2002_v12 = vmul.f32 %v3200_v26, %v3200_v26 }
  0x46   : > { %2654 = vmatmul.mubr.bf16.gmra.mrb[12].mxu0 %v507_v37  ;;  %v1525_v37 = vsel %vm973_vm0, %v1501_v35, 0.0  ;;  %v3215_v35 = vld [vmem:[%s3085_s19 + $0x30] sm:$0xff] }
  0x47   : > { %1526 = vadd.xlane.f32.xlu0 %v1525_v37  ;;  %v1825_v37 = vsel %vm973_vm0, %v1801_v33, 0.0  ;;  %v1803_v6 = vmul.f32 %v3215_v35, %v3079_v13  ;;  %v1540_v13 = vsel %vm973_vm0, %v1506_v45, 0.0  ;;  %v1605_v33 = vmul.f32 %v3227_v7, %v3227_v7 }
  0x48   : > { %1917 = vadd.xlane.f32.xlu1 %v1916_v43  ;;  %v1834_v43 = vsel %vm973_vm0, %v1804_v38, 0.0 }
  0x4b   : > { %1914 = vadd.xlane.f32.xlu0 %v1913_v44  ;;  %v1831_v44 = vsel %vm973_vm0, %v1803_v6, 0.0 }
  0x4c   : > { %1535 = vadd.xlane.f32.xlu1 %v1534_v48  ;;  %v1902_v48 = vmul.f32 %v3200_v26, %v3116_v30 }
  0x4f   : > { %1532 = vadd.xlane.f32.xlu0 %v1531_v49  ;;  %v1901_v49 = vmul.f32 %v3203_v27, %v3119_v31  ;;  %v1928_v31 = vsel %vm973_vm0, %v1902_v48, 0.0  ;;  %v1637_v48 = vsel %vm973_vm0, %v1605_v33, 0.0 }
  0x50   : > { %1923 = vadd.xlane.f32.xlu1 %v1922_v52  ;;  %v3250_v52 = vld [vmem:[%s3013_s16 + $0x50] sm:$0xff] }
  0x53   : > { %1920 = vadd.xlane.f32.xlu0 %v1919_v53 }
  0x54   : > { %1629 = vadd.xlane.f32.xlu1 %v1628_v58  ;;  %v1925_v58 = vsel %vm973_vm0, %v1901_v49, 0.0  ;;  %v2001_v49 = vmul.f32 %v3203_v27, %v3203_v27 }
  0x57   : > { %1626 = vadd.xlane.f32.xlu0 %v1625_v59  ;;  %v1507_v59 = vmul.f32 %v3250_v52, %v3191_v17 }
  0x58   : > { %2017 = vadd.xlane.f32.xlu1 %v2016_v62 }
  0x59   : > { %v1543_v5 = vsel %vm973_vm0, %v1507_v59, 0.0 }
  0x5b   : > { %2014 = vadd.xlane.f32.xlu0 %v2013_v63 }
  0x5c   : > { %1635 = vadd.xlane.f32.xlu1 %v1634_v2  ;;  %v1904_v2 = vmul.f32 %v3212_v34, %v3134_v40 }
  0x5f   : > { %1632 = vadd.xlane.f32.xlu0 %v1631_v3 }
  0x60   : > { %2023 = vadd.xlane.f32.xlu1 %v2022_v10  ;;  %v1903_v10 = vmul.f32 %v3215_v35, %v3137_v41 }
  0x62   : > { %v1931_v32 = vsel %vm973_vm0, %v1903_v10, 0.0  ;;  %v2004_v10 = vmul.f32 %v3212_v34, %v3212_v34 }
  0x63   : > { %2020 = vadd.xlane.f32.xlu0 %v2019_v11 }
  0x64   : > { %1341 = vadd.xlane.f32.xlu1 %v1340_v20 }
  0x67   : > { %1338 = vadd.xlane.f32.xlu0 %v1337_v21 }
  0x68   : > { %1347 = vadd.xlane.f32.xlu1 %v1346_v28 }
  0x6b   : > { %1344 = vadd.xlane.f32.xlu0 %v1343_v29  ;;  %v1934_v29 = vsel %vm973_vm0, %v1904_v2, 0.0 }
  0x6c   : > { %1829 = vadd.xlane.f32.xlu1 %v1828_v36 }
  0x6f   : > { %1826 = vadd.xlane.f32.xlu0 %v1825_v37 }
  0x70   : > { %1835 = vadd.xlane.f32.xlu1 %v1834_v43 }
  0x73   : > { %1832 = vadd.xlane.f32.xlu0 %v1831_v44 }
  0x74   : > { %1541 = vadd.xlane.f32.xlu1 %v1540_v13 }
  0x77   : > { %1538 = vadd.xlane.f32.xlu0 %v1537_v47  ;;  %v1640_v47 = vsel %vm973_vm0, %v1606_v22, 0.0 }
  0x78   : > { %1929 = vadd.xlane.f32.xlu1 %v1928_v31  ;;  %v1608_v31 = vmul.f32 %v3242_v50, %v3242_v50 }
  0x7b   : > { %1926 = vadd.xlane.f32.xlu0 %v1925_v58 }
  0x7c   : > { %1547 = vadd.xlane.f32.xlu1 %v1546_v1 }
  0x7f   : > { %1544 = vadd.xlane.f32.xlu0 %v1543_v5 }
  0x80   : > { %1935 = vadd.xlane.f32.xlu1 %v1934_v29 }
  0x83   : > { %1932 = vadd.xlane.f32.xlu0 %v1931_v32 }
  0x84   : > { %1641 = vadd.xlane.f32.xlu1 %v1640_v47 }
  0x87   : > { %1638 = vadd.xlane.f32.xlu0 %v1637_v48 }
 0x101   : > { %v2643_v53 = vpop.f32.mrb[0].mxu0 }
 0x102   : > { %v622_v30 = vadd.f32 %v2643_v53, %v3247_v51  ;;  %v613_v55 = vpop.f32.mrb[1].mxu0 }
 0x103   : > { %v614_v60 = vadd.f32 %v3247_v51, %v613_v55  ;;  %v2644_v61 = vpop.f32.mrb[2].mxu0 }
 0x104   : > { %v625_v62 = vadd.f32 %v2644_v61, %v3247_v51  ;;  %v616_v63 = vpop.f32.mrb[3].mxu0  ;;  %v678_v3 = vmax.f32 %v622_v30, 0.0  ;;  %v2025_v61 = vsel %vm973_vm0, %v2001_v49, 0.0 }
 0x105   : > { %v617_v0 = vadd.f32 %v3247_v51, %v616_v63  ;;  %v676_v11 = vmax.f32 %v614_v60, 0.0  ;;  %v2028_v60 = vsel %vm973_vm0, %v2002_v12, 0.0  ;;  %2026 = vadd.xlane.f32.xlu0 %v2025_v61  ;;  %v3329_v61 = vld [vmem:[%s3085_s19 + $0x48] sm:$0xff] }
 0x106   : > { %v679_v4 = vmax.f32 %v625_v62, 0.0  ;;  %v1607_v62 = vmul.f32 %v3250_v52, %v3250_v52  ;;  %2029 = vadd.xlane.f32.xlu1 %v2028_v60 }
 0x107   : > { %v677_v14 = vmax.f32 %v617_v0, 0.0 }
 0x108   : > { %v693_v15 = vpack.c.bf16 %v679_v4, %v678_v3 }
 0x109   : > { %v2647_v20 = vpop.f32.mrb[4].mxu0  ;;  %v692_v21 = vpack.c.bf16 %v677_v14, %v676_v11  ;;  %v1646_v14 = vsel %vm973_vm0, %v1608_v31, 0.0 }
 0x10a   : > { %v638_v23 = vadd.f32 %v2647_v20, %v3247_v51  ;;  %v629_v28 = vpop.f32.mrb[5].mxu0  ;;  %v2003_v20 = vmul.f32 %v3215_v35, %v3215_v35  ;;  %1647 = vadd.xlane.f32.xlu1 %v1646_v14 }
 0x10b   : > { %v630_v36 = vadd.f32 %v3247_v51, %v629_v28  ;;  %v2648_v37 = vpop.f32.mrb[6].mxu0  ;;  %2673 = vmatprep.mubr.bf16.mxu1 %v692_v21  ;;  %v3301_v21 = vld [vmem:[%s3007_s13 + $0x68] sm:$0xff] }
 0x10c   : > { %v682_v38 = vmax.f32 %v638_v23, 0.0  ;;  %v641_v6 = vadd.f32 %v2648_v37, %v3247_v51  ;;  %v632_v43 = vpop.f32.mrb[7].mxu0  ;;  %2674 = vmatmul.mubr.bf16.vlgmr.msra.gmra.mrb[0].mxu1 %v693_v15  ;;  %v1643_v15 = vsel %vm973_vm0, %v1607_v62, 0.0  ;;  %v3304_v23 = vld [vmem:[%s3007_s13 + $0x60] sm:$0xff]  ;;  %v1310_v33 = vmul.f32 %v3301_v21, %v3301_v21 }
 0x10d   : > { %v680_v44 = vmax.f32 %v630_v36, 0.0  ;;  %v633_v45 = vadd.f32 %v3247_v51, %v632_v43  ;;  %1644 = vadd.xlane.f32.xlu0 %v1643_v15  ;;  %v1309_v43 = vmul.f32 %v3304_v23, %v3304_v23  ;;  %v3332_v62 = vld [vmem:[%s3085_s19 + $0x40] sm:$0xff] }
 0x10e   : > { %v683_v13 = vmax.f32 %v641_v6, 0.0  ;;  %v2031_v6 = vsel %vm973_vm0, %v2003_v20, 0.0  ;;  %v1352_v31 = vsel %vm973_vm0, %v1310_v33, 0.0  ;;  %v3356_v15 = vld [vmem:[%s3013_s16 + $0x60] sm:$0xff] }
 0x10f   : > { %v681_v53 = vmax.f32 %v633_v45, 0.0 }
 0x110   : > { %v695_v54 = vpack.c.bf16 %v683_v13, %v682_v38  ;;  %v2034_v38 = vsel %vm973_vm0, %v2004_v10, 0.0  ;;  %v3318_v13 = vld [vmem:[%s3007_s13 + $0x70] sm:$0xff] }
 0x111   : > { %v694_v30 = vpack.c.bf16 %v681_v53, %v680_v44  ;;  %v2651_v55 = vpop.f32.mrb[8].mxu0  ;;  %v3314_v44 = vld [vmem:[%s3007_s13 + $0x78] sm:$0xff]  ;;  %2035 = vadd.xlane.f32.xlu1 %v2034_v38  ;;  %2032 = vadd.xlane.f32.xlu0 %v2031_v6  ;;  %v3374_v6 = vld [vmem:[%s3013_s16 + $0x70] sm:$0xff] }
 0x112   : > { %v654_v58 = vadd.f32 %v2651_v55, %v3247_v51  ;;  %v645_v59 = vpop.f32.mrb[9].mxu0  ;;  %v3371_v38 = vld [vmem:[%s3013_s16 + $0x78] sm:$0xff] }
 0x113   : > { %v646_v63 = vadd.f32 %v3247_v51, %v645_v59  ;;  %v2652_v0 = vpop.f32.mrb[10].mxu0  ;;  %2677 = vmatprep.mubr.bf16.mxu1 %v694_v30  ;;  %v1312_v30 = vmul.f32 %v3314_v44, %v3314_v44  ;;  %v1311_v59 = vmul.f32 %v3318_v13, %v3318_v13 }
 0x114   : > { %v686_v1 = vmax.f32 %v654_v58, 0.0  ;;  %v657_v2 = vadd.f32 %v2652_v0, %v3247_v51  ;;  %v648_v3 = vpop.f32.mrb[11].mxu0  ;;  %2678 = vmatmul.mubr.bf16.gmra.mrb[4].mxu1 %v695_v54  ;;  %v1349_v58 = vsel %vm973_vm0, %v1309_v43, 0.0 }
 0x115   : > { %v684_v4 = vmax.f32 %v646_v63, 0.0  ;;  %v649_v5 = vadd.f32 %v3247_v51, %v648_v3  ;;  %1353 = vadd.xlane.f32.xlu1 %v1352_v31  ;;  %1350 = vadd.xlane.f32.xlu0 %v1349_v58  ;;  %v1358_v0 = vsel %vm973_vm0, %v1312_v30, 0.0  ;;  %v1805_v3 = vmul.f32 %v3332_v62, %v3179_v9  ;;  %v3353_v9 = vld [vmem:[%s3013_s16 + $0x68] sm:$0xff] }
 0x116   : > { %v687_v11 = vmax.f32 %v657_v2, 0.0  ;;  %v1806_v2 = vmul.f32 %v3329_v61, %v3176_v8  ;;  %v1610_v30 = vmul.f32 %v3353_v9, %v3353_v9 }
 0x117   : > { %v685_v22 = vmax.f32 %v649_v5, 0.0  ;;  %v3344_v5 = vld [vmem:[%s3085_s19 + $0x50] sm:$0xff] }
 0x118   : > { %v697_v28 = vpack.c.bf16 %v687_v11, %v686_v1  ;;  %v1355_v1 = vsel %vm973_vm0, %v1311_v59, 0.0  ;;  %v1840_v10 = vsel %vm973_vm0, %v1806_v2, 0.0  ;;  %v1837_v11 = vsel %vm973_vm0, %v1805_v3, 0.0 }
 0x119   : > { %v696_v29 = vpack.c.bf16 %v685_v22, %v684_v4  ;;  %v2655_v32 = vpop.f32.mrb[12].mxu0  ;;  %v3341_v4 = vld [vmem:[%s3085_s19 + $0x58] sm:$0xff]  ;;  %1359 = vadd.xlane.f32.xlu1 %v1358_v0  ;;  %1356 = vadd.xlane.f32.xlu0 %v1355_v1  ;;  %v1807_v8 = vmul.f32 %v3344_v5, %v3191_v17  ;;  %v1652_v31 = vsel %vm973_vm0, %v1610_v30, 0.0  ;;  %v2006_v59 = vmul.f32 %v3329_v61, %v3329_v61  ;;  %v3449_v30 = vpop.xlane.xlu0 %1314 }
 0x11a   : > { %v670_v36 = vadd.f32 %v2655_v32, %v3247_v51  ;;  %v661_v37 = vpop.f32.mrb[13].mxu0  ;;  %v1808_v14 = vmul.f32 %v3341_v4, %v3188_v16  ;;  %v1612_v0 = vmul.f32 %v3371_v38, %v3371_v38  ;;  %v1611_v1 = vmul.f32 %v3374_v6, %v3374_v6 }
 0x11b   : > { %2681 = vmatprep.mubr.bf16.mxu1 %v696_v29  ;;  %v662_v45 = vadd.f32 %v3247_v51, %v661_v37  ;;  %v2656_v12 = vpop.f32.mrb[14].mxu0  ;;  %v1843_v22 = vsel %vm973_vm0, %v1807_v8, 0.0  ;;  %v1509_v29 = vmul.f32 %v3356_v15, %v3304_v23  ;;  %v1905_v37 = vmul.f32 %v3332_v62, %v3227_v7 }
 0x11c   : > { %v690_v47 = vmax.f32 %v670_v36, 0.0  ;;  %2682 = vmatmul.mubr.bf16.gmra.mrb[8].mxu1 %v697_v28  ;;  %v673_v48 = vadd.f32 %v2656_v12, %v3247_v51  ;;  %v664_v49 = vpop.f32.mrb[15].mxu0  ;;  %v1846_v20 = vsel %vm973_vm0, %v1808_v14, 0.0  ;;  %v1510_v28 = vmul.f32 %v3353_v9, %v3301_v21 }
 0x11d   : > { %v688_v53 = vmax.f32 %v662_v45, 0.0  ;;  %v665_v54 = vadd.f32 %v3247_v51, %v664_v49  ;;  %1841 = vadd.xlane.f32.xlu1 %v1840_v10  ;;  %1838 = vadd.xlane.f32.xlu0 %v1837_v11  ;;  %v1549_v33 = vsel %vm973_vm0, %v1509_v29, 0.0  ;;  %v1906_v36 = vmul.f32 %v3329_v61, %v3224_v39 }
 0x11e   : > { %v691_v55 = vmax.f32 %v673_v48, 0.0  ;;  %v1552_v32 = vsel %vm973_vm0, %v1510_v28, 0.0  ;;  %v1937_v45 = vsel %vm973_vm0, %v1905_v37, 0.0  ;;  %v1512_v12 = vmul.f32 %v3371_v38, %v3314_v44  ;;  %v3430_v37 = vld [vmem:[%s3085_s19 + $0x70] sm:$0xff] }
 0x11f   : > { %v689_v60 = vmax.f32 %v665_v54, 0.0  ;;  %v1940_v43 = vsel %vm973_vm0, %v1906_v36, 0.0  ;;  %v1908_v48 = vmul.f32 %v3341_v4, %v3242_v50  ;;  %v1907_v49 = vmul.f32 %v3344_v5, %v3250_v52  ;;  %v3427_v36 = vld [vmem:[%s3085_s19 + $0x78] sm:$0xff] }
 0x120   : > { %v699_v51 = vpack.c.bf16 %v691_v55, %v690_v47  ;;  %v1511_v47 = vmul.f32 %v3374_v6, %v3318_v13  ;;  %v1558_v39 = vsel %vm973_vm0, %v1512_v12, 0.0  ;;  %v1609_v55 = vmul.f32 %v3356_v15, %v3356_v15  ;;  %v2763_v12 = vld [vmem:[%s4668_s8] sm:$0xff]  }
 0x121   : > { %v698_v63 = vpack.c.bf16 %v689_v60, %v688_v53  ;;  %1847 = vadd.xlane.f32.xlu1 %v1846_v20  ;;  %1844 = vadd.xlane.f32.xlu0 %v1843_v22  ;;  %v1946_v53 = vsel %vm973_vm0, %v1908_v48, 0.0  ;;  %v1943_v54 = vsel %vm973_vm0, %v1907_v49, 0.0  ;;  %v2005_v60 = vmul.f32 %v3332_v62, %v3332_v62  ;;  %v3415_v20 = vld [vmem:[%s3085_s19 + $0x68] sm:$0xff]  ;;  %v3418_v22 = vld [vmem:[%s3085_s19 + $0x60] sm:$0xff] }
 0x122   : > { %v1555_v7 = vsel %vm973_vm0, %v1511_v47, 0.0  ;;  %v1649_v58 = vsel %vm973_vm0, %v1609_v55, 0.0  ;;  %v1658_v2 = vsel %vm973_vm0, %v1612_v0, 0.0  ;;  %v1655_v3 = vsel %vm973_vm0, %v1611_v1, 0.0  ;;  %2689 = vmatprep.subr.bf16.mxu0 %v2763_v12 }
 0x123   : > { %2685 = vmatprep.mubr.bf16.mxu1 %v698_v63  ;;  %v2037_v63 = vsel %vm973_vm0, %v2005_v60, 0.0  ;;  %v2008_v10 = vmul.f32 %v3341_v4, %v3341_v4  ;;  %v2007_v11 = vmul.f32 %v3344_v5, %v3344_v5  ;;  %v1810_v28 = vmul.f32 %v3415_v20, %v3301_v21  ;;  %2690 = vmatpush3.bf16.msra.mxu0 %v2763_v12 }
 0x124   : > { %2686 = vmatmul.mubr.bf16.gmra.mrb[12].mxu1 %v699_v51  ;;  %v2040_v51 = vsel %vm973_vm0, %v2006_v59, 0.0  ;;  %v1809_v29 = vmul.f32 %v3418_v22, %v3304_v23  ;;  %v1909_v48 = vmul.f32 %v3418_v22, %v3356_v15 }
 0x125   : > { %1553 = vadd.xlane.f32.xlu1 %v1552_v32  ;;  %1550 = vadd.xlane.f32.xlu0 %v1549_v33  ;;  %v2046_v14 = vsel %vm973_vm0, %v2008_v10, 0.0  ;;  %v2043_v8 = vsel %vm973_vm0, %v2007_v11, 0.0  ;;  %v1852_v32 = vsel %vm973_vm0, %v1810_v28, 0.0 }
 0x126   : > { %v1849_v33 = vsel %vm973_vm0, %v1809_v29, 0.0 }
 0x129   : > { %1941 = vadd.xlane.f32.xlu1 %v1940_v43  ;;  %1938 = vadd.xlane.f32.xlu0 %v1937_v45  ;;  %v1812_v43 = vmul.f32 %v3427_v36, %v3314_v44  ;;  %v1811_v45 = vmul.f32 %v3430_v37, %v3318_v13 }
 0x12b   : > { %v1858_v47 = vsel %vm973_vm0, %v1812_v43, 0.0 }
 0x12d   : > { %1559 = vadd.xlane.f32.xlu1 %v1558_v39  ;;  %1556 = vadd.xlane.f32.xlu0 %v1555_v7  ;;  %v1855_v39 = vsel %vm973_vm0, %v1811_v45, 0.0  ;;  %v1910_v7 = vmul.f32 %v3415_v20, %v3353_v9 }
 0x12f   : > { %v1952_v49 = vsel %vm973_vm0, %v1910_v7, 0.0 }
 0x131   : > { %1947 = vadd.xlane.f32.xlu1 %v1946_v53  ;;  %1944 = vadd.xlane.f32.xlu0 %v1943_v54  ;;  %v1949_v53 = vsel %vm973_vm0, %v1909_v48, 0.0  ;;  %v3447_v54 = vpop.xlane.xlu1 %1317 }
 0x135   : > { %1653 = vadd.xlane.f32.xlu1 %v1652_v31  ;;  %1650 = vadd.xlane.f32.xlu0 %v1649_v58  ;;  %v3451_v55 = vpop.xlane.xlu1 %1323  ;;  %v3453_v31 = vpop.xlane.xlu0 %1320 }
 0x139   : > { %2041 = vadd.xlane.f32.xlu1 %v2040_v51  ;;  %2038 = vadd.xlane.f32.xlu0 %v2037_v63  ;;  %v3455_v58 = vpop.xlane.xlu1 %1517  ;;  %v3457_v59 = vpop.xlane.xlu0 %1514 }
 0x13d   : > { %1659 = vadd.xlane.f32.xlu1 %v1658_v2  ;;  %1656 = vadd.xlane.f32.xlu0 %v1655_v3  ;;  %v3459_v60 = vpop.xlane.xlu1 %1523  ;;  %v3461_v51 = vpop.xlane.xlu0 %1520 }
 0x141   : > { %2047 = vadd.xlane.f32.xlu1 %v2046_v14  ;;  %2044 = vadd.xlane.f32.xlu0 %v2043_v8  ;;  %v3463_v63 = vpop.xlane.xlu1 %1617  ;;  %v3465_v0 = vpop.xlane.xlu0 %1614 }
 0x145   : > { %1853 = vadd.xlane.f32.xlu1 %v1852_v32  ;;  %1850 = vadd.xlane.f32.xlu0 %v1849_v33  ;;  %v3467_v1 = vpop.xlane.xlu1 %1623  ;;  %v3469_v2 = vpop.xlane.xlu0 %1620 }
 0x146   : > { %4684 = vst [vmem:[#allocation2_spill] sm:$0xff] %v3467_v1  ;;  %4685 = vst [vmem:[#allocation3_spill] sm:$0xff] %v3469_v2 }
 0x149   : > { %1859 = vadd.xlane.f32.xlu1 %v1858_v47  ;;  %1856 = vadd.xlane.f32.xlu0 %v1855_v39  ;;  %v3471_v3 = vpop.xlane.xlu1 %1329  ;;  %v3473_v10 = vpop.xlane.xlu0 %1326 }
 0x14a   : > { %4686 = vst [vmem:[#allocation4_spill] sm:$0xff] %v3471_v3  ;;  %4687 = vst [vmem:[#allocation5_spill] sm:$0xff] %v3473_v10 }
 0x14d   : > { %1953 = vadd.xlane.f32.xlu1 %v1952_v49  ;;  %1950 = vadd.xlane.f32.xlu0 %v1949_v53  ;;  %v3475_v11 = vpop.xlane.xlu1 %1335  ;;  %v3477_v14 = vpop.xlane.xlu0 %1332 }
 0x14e   : > { %4688 = vst [vmem:[#allocation6_spill] sm:$0xff] %v3475_v11  ;;  %4689 = vst [vmem:[#allocation7_spill] sm:$0xff] %v3477_v14 }
 0x151   : > { %v3479_v8 = vpop.xlane.xlu1 %1817  ;;  %v3481_v28 = vpop.xlane.xlu0 %1814 }
 0x152   : > { %4690 = vst [vmem:[#allocation8_spill] sm:$0xff] %v3479_v8  ;;  %4691 = vst [vmem:[#allocation9_spill] sm:$0xff] %v3481_v28 }
 0x155   : > { %v3483_v29 = vpop.xlane.xlu1 %1823  ;;  %v3485_v32 = vpop.xlane.xlu0 %1820 }
 0x156   : > { %4692 = vst [vmem:[#allocation10_spill] sm:$0xff] %v3483_v29  ;;  %4693 = vst [vmem:[#allocation11_spill] sm:$0xff] %v3485_v32 }
 0x159   : > { %v3487_v33 = vpop.xlane.xlu1 %1529  ;;  %v3489_v43 = vpop.xlane.xlu0 %1526 }
 0x15a   : > { %4694 = vst [vmem:[#allocation12_spill] sm:$0xff] %v3487_v33  ;;  %4695 = vst [vmem:[#allocation13_spill] sm:$0xff] %v3489_v43 }
 0x15d   : > { %v3491_v45 = vpop.xlane.xlu1 %1917  ;;  %v3493_v12 = vpop.xlane.xlu0 %1914 }
 0x15e   : > { %4696 = vst [vmem:[#allocation14_spill] sm:$0xff] %v3491_v45  ;;  %4697 = vst [vmem:[#allocation15_spill] sm:$0xff] %v3493_v12 }
 0x161   : > { %v3495_v47 = vpop.xlane.xlu1 %1535  ;;  %v3497_v39 = vpop.xlane.xlu0 %1532 }
 0x162   : > { %4698 = vst [vmem:[#allocation16_spill] sm:$0xff] %v3495_v47  ;;  %4699 = vst [vmem:[#allocation17_spill] sm:$0xff] %v3497_v39 }
 0x165   : > { %v3499_v7 = vpop.xlane.xlu1 %1923  ;;  %v3501_v48 = vpop.xlane.xlu0 %1920 }
 0x166   : > { %4700 = vst [vmem:[#allocation18_spill] sm:$0xff] %v3499_v7  ;;  %4701 = vst [vmem:[#allocation19_spill] sm:$0xff] %v3501_v48 }
 0x169   : > { %v3503_v49 = vpop.xlane.xlu1 %1629  ;;  %v3505_v53 = vpop.xlane.xlu0 %1626 }
 0x16a   : > { %4702 = vst [vmem:[#allocation20_spill] sm:$0xff] %v3503_v49  ;;  %4703 = vst [vmem:[#allocation21_spill] sm:$0xff] %v3505_v53  ;;  %v3526_v53 = vld [vmem:[%s4667_s7] ss:$0 sm:$0xff] }
 0x16d   : > { %v3507_v32 = vpop.xlane.xlu1 %2017  ;;  %v3509_v33 = vpop.xlane.xlu0 %2014 }
 0x16e   : > { %4704 = vst [vmem:[#allocation22_spill] sm:$0xff] %v3507_v32  ;;  %4705 = vst [vmem:[#allocation23_spill] sm:$0xff] %v3509_v33 }
 0x171   : > { %v3511_v43 = vpop.xlane.xlu1 %1635  ;;  %v3513_v45 = vpop.xlane.xlu0 %1632 }
 0x172   : > { %4706 = vst [vmem:[#allocation24_spill] sm:$0xff] %v3511_v43  ;;  %4707 = vst [vmem:[#allocation25_spill] sm:$0xff] %v3513_v45 }
 0x175   : > { %v3515_v12 = vpop.xlane.xlu1 %2023  ;;  %v3517_v47 = vpop.xlane.xlu0 %2020 }
 0x176   : > { %4708 = vst [vmem:[#allocation26_spill] sm:$0xff] %v3515_v12  ;;  %4709 = vst [vmem:[#allocation27_spill] sm:$0xff] %v3517_v47 }
 0x179   : > { %v3519_v39 = vpop.xlane.xlu1 %1341  ;;  %v3521_v7 = vpop.xlane.xlu0 %1338 }
 0x17a   : > { %4710 = vst [vmem:[#allocation28_spill] sm:$0xff] %v3519_v39  ;;  %4711 = vst [vmem:[#allocation29_spill] sm:$0xff] %v3521_v7 }
 0x17d   : > { %v3528_v32 = vpop.xlane.xlu1 %1347  ;;  %v3530_v33 = vpop.xlane.xlu0 %1344 }
 0x17e   : > { %4712 = vst [vmem:[#allocation30_spill] sm:$0xff] %v3528_v32  ;;  %4713 = vst [vmem:[#allocation31_spill] sm:$0xff] %v3530_v33 }
 0x181   : > { %v3536_v29 = vpop.xlane.xlu1 %1829  ;;  %v3538_v14 = vpop.xlane.xlu0 %1826 }
 0x182   : > { %4714 = vst [vmem:[#allocation32_spill] sm:$0xff] %v3536_v29  ;;  %4715 = vst [vmem:[#allocation33_spill] sm:$0xff] %v3538_v14 }
 0x1df   : > { %v2675_v43 = vpop.f32.mrb[0].mxu1 }
 0x1e0   : > { %v814_v45 = vadd.f32 %v2675_v43, %v3526_v53  ;;  %v805_v49 = vpop.f32.mrb[1].mxu1 }
 0x1e1   : > { %v806_v12 = vadd.f32 %v3526_v53, %v805_v49  ;;  %v2676_v47 = vpop.f32.mrb[2].mxu1 }
 0x1e2   : > { %v817_v39 = vadd.f32 %v2676_v47, %v3526_v53  ;;  %v808_v48 = vpop.f32.mrb[3].mxu1  ;;  %v870_v28 = vmax.f32 %v814_v45, 0.0  ;;  %v3545_v45 = vpop.xlane.xlu1 %1835 }
 0x1e3   : > { %v809_v7 = vadd.f32 %v3526_v53, %v808_v48  ;;  %v868_v32 = vmax.f32 %v806_v12, 0.0  ;;  %4716 = vst [vmem:[#allocation34_spill] sm:$0xff] %v3545_v45 }
 0x1e4   : > { %v871_v8 = vmax.f32 %v817_v39, 0.0 }
 0x1e5   : > { %v869_v33 = vmax.f32 %v809_v7, 0.0 }
 0x1e6   : > { %v885_v11 = vpack.c.bf16 %v871_v8, %v870_v28 }
 0x1e7   : > { %v884_v10 = vpack.c.bf16 %v869_v33, %v868_v32  ;;  %v2679_v43 = vpop.f32.mrb[4].mxu1  ;;  %v3550_v32 = vpop.xlane.xlu0 %1832 }
 0x1e8   : > { %v894_v3 = vunpack.c.l.bf16 %v885_v11  ;;  %v3540_v2 = vunpack.c.h.bf16 %v885_v11  ;;  %v830_v49 = vadd.f32 %v2679_v43, %v3526_v53  ;;  %v821_v47 = vpop.f32.mrb[5].mxu1  ;;  %4717 = vst [vmem:[#allocation35_spill] sm:$0xff] %v3550_v32  ;;  %v3563_v32 = vpop.xlane.xlu1 %1541 }
 0x1e9   : > { %v822_v1 = vadd.f32 %v3526_v53, %v821_v47  ;;  %v2680_v48 = vpop.f32.mrb[6].mxu1  ;;  %2691 = vmatprep.mubr.msk.bf16.mxu0 %vm973_vm0, %v884_v10 }
 0x1ea   : > { %v874_v39 = vmax.f32 %v830_v49, 0.0  ;;  %v833_v12 = vadd.f32 %v2680_v48, %v3526_v53  ;;  %v824_v7 = vpop.f32.mrb[7].mxu1  ;;  %2692 = vmatmul.mubr.msk.bf16.vlgmr.msra.gmra.mrb[16].mxu0 %vm973_vm0, %v885_v11  ;;  %v1199_v8 = vmul.f32 %v3023_v46, %v894_v3  ;;  %v1099_v28 = vmul.f32 %v894_v3, %v894_v3 }
 0x1eb   : > { %v872_v33 = vmax.f32 %v822_v1, 0.0  ;;  %v825_v43 = vadd.f32 %v3526_v53, %v824_v7  ;;  %v1399_v47 = vmul.f32 %v3043_v57, %v894_v3  ;;  %v1100_v48 = vmul.f32 %v3540_v2, %v3540_v2 }
 0x1ec   : > { %v875_v14 = vmax.f32 %v833_v12, 0.0  ;;  %v1219_v29 = vsel %vm973_vm0, %v1199_v8, 0.0  ;;  %v1119_v49 = vsel %vm973_vm0, %v1099_v28, 0.0  ;;  %v1699_v7 = vmul.f32 %v3107_v25, %v894_v3 }
 0x1ed   : > { %v873_v45 = vmax.f32 %v825_v43, 0.0  ;;  %1220 = vadd.xlane.f32.xlu0 %v1219_v29  ;;  %1120 = vadd.xlane.f32.xlu1 %v1119_v49  ;;  %v1419_v8 = vsel %vm973_vm0, %v1399_v47, 0.0  ;;  %v1122_v28 = vsel %vm973_vm0, %v1100_v48, 0.0  ;;  %v1200_v29 = vmul.f32 %v3018_v42, %v3540_v2  ;;  %v3570_v43 = vpop.xlane.xlu0 %1538 }
 0x1ee   : > { %v3558_v46 = vpack.c.bf16 %v875_v14, %v874_v39  ;;  %4718 = vst [vmem:[#allocation36_spill] sm:$0xff] %v3570_v43  ;;  %v3572_v14 = vunpack.c.l.bf16 %v884_v10  ;;  %v1719_v48 = vsel %vm973_vm0, %v1699_v7, 0.0 }
 0x1ef   : > { %v3560_v11 = vpack.c.bf16 %v873_v45, %v872_v33  ;;  %v2683_v1 = vpop.f32.mrb[8].mxu1 }
 0x1f0   : > { %v846_v57 = vadd.f32 %v2683_v1, %v3526_v53  ;;  %v837_v12 = vpop.f32.mrb[9].mxu1  ;;  %v1222_v1 = vsel %vm973_vm0, %v1200_v29, 0.0 }
 0x1f1   : > { %v838_v45 = vadd.f32 %v3526_v53, %v837_v12  ;;  %1420 = vadd.xlane.f32.xlu0 %v1419_v8  ;;  %1123 = vadd.xlane.f32.xlu1 %v1122_v28  ;;  %v2684_v25 = vpop.f32.mrb[10].mxu1  ;;  %v893_v12 = vunpack.c.h.bf16 %v884_v10  ;;  %v1097_v28 = vmul.f32 %v3572_v14, %v3572_v14 }
 0x1f2   : > { %v878_v3 = vmax.f32 %v846_v57, 0.0  ;;  %v849_v39 = vadd.f32 %v2684_v25, %v3526_v53  ;;  %2695 = vmatprep.mubr.msk.bf16.mxu0 %vm973_vm0, %v3560_v11  ;;  %v840_v33 = vpop.f32.mrb[11].mxu1  ;;  %v1400_v57 = vmul.f32 %v3040_v56, %v3540_v2  ;;  %v3589_v25 = vpop.xlane.xlu1 %1929 }
 0x1f3   : > { %v876_v47 = vmax.f32 %v838_v45, 0.0  ;;  %v841_v49 = vadd.f32 %v3526_v53, %v840_v33  ;;  %2696 = vmatmul.mubr.msk.bf16.gmra.mrb[20].mxu0 %vm973_vm0, %v3558_v46  ;;  %4719 = vst [vmem:[#allocation37_spill] sm:$0xff] %v3589_v25  ;;  %v3591_v33 = vpop.xlane.xlu0 %1926  ;;  %v2837_v25 = vld [vmem:[%s3007_s13] sm:$0xff] }
 0x1f4   : > { %v879_v42 = vmax.f32 %v849_v39, 0.0  ;;  %4720 = vst [vmem:[#allocation38_spill] sm:$0xff] %v3591_v33  ;;  %v1422_v29 = vsel %vm973_vm0, %v1400_v57, 0.0 }
 0x1f5   : > { %v877_v8 = vmax.f32 %v841_v49, 0.0  ;;  %1720 = vadd.xlane.f32.xlu0 %v1719_v48  ;;  %1223 = vadd.xlane.f32.xlu1 %v1222_v1  ;;  %v1700_v49 = vmul.f32 %v3104_v24, %v3540_v2  ;;  %v1098_v48 = vmul.f32 %v893_v12, %v893_v12 }
 0x1f6   : > { %v3587_v45 = vpack.c.bf16 %v879_v42, %v878_v3  ;;  %v1113_v3 = vsel %vm973_vm0, %v1097_v28, 0.0  ;;  %v3609_v33 = vpop.xlane.xlu1 %1547 }
 0x1f7   : > { %v3593_v39 = vpack.c.bf16 %v877_v8, %v876_v47  ;;  %v2687_v7 = vpop.f32.mrb[12].mxu1  ;;  %v1722_v28 = vsel %vm973_vm0, %v1700_v49, 0.0 }
 0x1f8   : > { %v862_v56 = vadd.f32 %v2687_v7, %v3526_v53  ;;  %v853_v10 = vpop.f32.mrb[13].mxu1 }
 0x1f9   : > { %1423 = vadd.xlane.f32.xlu1 %v1422_v29  ;;  %2699 = vmatprep.mubr.msk.bf16.mxu0 %vm973_vm0, %v3593_v39  ;;  %v854_v42 = vadd.f32 %v3526_v53, %v853_v10  ;;  %v2688_v47 = vpop.f32.mrb[14].mxu1  ;;  %v2836_v29 = vld [vmem:[%s3007_s13 + $0x8] sm:$0xff] }
 0x1fa   : > { %1114 = vadd.xlane.f32.xlu0 %v1113_v3  ;;  %v882_v1 = vmax.f32 %v862_v56, 0.0  ;;  %v865_v57 = vadd.f32 %v2688_v47, %v3526_v53  ;;  %v856_v8 = vpop.f32.mrb[15].mxu1  ;;  %v1198_v10 = vmul.f32 %v2836_v29, %v893_v12  ;;  %v3611_v3 = vpop.xlane.xlu0 %1544  ;;  %v1116_v47 = vsel %vm973_vm0, %v1098_v48, 0.0 }
 0x1fb   : > { %2700 = vmatmul.mubr.msk.bf16.gmra.mrb[24].mxu0 %vm973_vm0, %v3587_v45  ;;  %v880_v24 = vmax.f32 %v854_v42, 0.0  ;;  %v857_v2 = vadd.f32 %v3526_v53, %v856_v8  ;;  %v1197_v42 = vmul.f32 %v2837_v25, %v3572_v14  ;;  %v3627_v25 = vpop.xlane.xlu1 %1935 }
 0x1fc   : > { %v883_v7 = vmax.f32 %v865_v57, 0.0  ;;  %v1216_v49 = vsel %vm973_vm0, %v1198_v10, 0.0  ;;  %v2838_v57 = vld [vmem:[%s3013_s16 + $0x8] sm:$0xff]  ;;  %v898_v10 = vunpack.c.l.bf16 %v3558_v46 }
 0x1fd   : > { %1723 = vadd.xlane.f32.xlu1 %v1722_v28  ;;  %v881_v56 = vmax.f32 %v857_v2, 0.0  ;;  %v1398_v8 = vmul.f32 %v2838_v57, %v893_v12  ;;  %v1213_v29 = vsel %vm973_vm0, %v1197_v42, 0.0  ;;  %v2839_v2 = vld [vmem:[%s3013_s16] sm:$0xff]  ;;  %v1698_v28 = vmul.f32 %v3094_v18, %v893_v12 }
 0x1fe   : > { %v3616_v43 = vpack.c.bf16 %v883_v7, %v882_v1  ;;  %1117 = vadd.xlane.f32.xlu0 %v1116_v47  ;;  %v1397_v48 = vmul.f32 %v2839_v2, %v3572_v14  ;;  %v3629_v1 = vpop.xlane.xlu0 %1932  ;;  %v1697_v47 = vmul.f32 %v3097_v19, %v3572_v14  ;;  %v1103_v12 = vmul.f32 %v898_v10, %v898_v10  ;;  %v2841_v14 = vld [vmem:[%s3007_s13 + $0x30] sm:$0xff] }
 0x1ff   : > { %v3618_v53 = vpack.c.bf16 %v881_v56, %v880_v24  ;;  %v899_v24 = vunpack.c.h.bf16 %v3558_v46  ;;  %v1416_v7 = vsel %vm973_vm0, %v1398_v8, 0.0  ;;  %v1716_v42 = vsel %vm973_vm0, %v1698_v28, 0.0  ;;  %v3641_v57 = vpop.xlane.xlu1 %1641  ;;  %v2840_v8 = vld [vmem:[%s3007_s13 + $0x38] sm:$0xff] }
 0x200   : > { %v1413_v56 = vsel %vm973_vm0, %v1397_v48, 0.0  ;;  %v1713_v18 = vsel %vm973_vm0, %v1697_v47, 0.0  ;;  %v1131_v19 = vsel %vm973_vm0, %v1103_v12, 0.0  ;;  %v1203_v48 = vmul.f32 %v2841_v14, %v898_v10 }
 0x201   : > { %1217 = vadd.xlane.f32.xlu1 %v1216_v49  ;;  %2703 = vmatprep.mubr.msk.bf16.mxu0 %vm973_vm0, %v3618_v53  ;;  %v1104_v49 = vmul.f32 %v899_v24, %v899_v24  ;;  %v1204_v2 = vmul.f32 %v2840_v8, %v899_v24  ;;  %v1404_v47 = vmul.f32 %v3134_v40, %v899_v24 }
 0x202   : > { %1214 = vadd.xlane.f32.xlu0 %v1213_v29  ;;  %v3643_v29 = vpop.xlane.xlu0 %1638 }
 0x203   : > { %2704 = vmatmul.mubr.msk.bf16.gmra.mrb[28].mxu0 %vm973_vm0, %v3616_v43  ;;  %v1134_v46 = vsel %vm973_vm0, %v1104_v49, 0.0  ;;  %v1403_v49 = vmul.f32 %v3137_v41, %v898_v10  ;;  %v1434_v12 = vsel %vm973_vm0, %v1404_v47, 0.0  ;;  %v1703_v41 = vmul.f32 %v3215_v35, %v898_v10  ;;  %v2843_v10 = vld [vmem:[%s3007_s13 + $0x20] sm:$0xff] }
 0x205   : > { %1417 = vadd.xlane.f32.xlu1 %v1416_v7  ;;  %v3650_v7 = vpop.xlane.xlu1 %2029  ;;  %v1431_v40 = vsel %vm973_vm0, %v1403_v49, 0.0 }
 0x206   : > { %1414 = vadd.xlane.f32.xlu0 %v1413_v56  ;;  %v3652_v28 = vpop.xlane.xlu0 %2026  ;;  %v1234_v56 = vsel %vm973_vm0, %v1204_v2, 0.0  ;;  %v896_v2 = vunpack.c.l.bf16 %v3560_v11 }
 0x209   : > { %1717 = vadd.xlane.f32.xlu1 %v1716_v42  ;;  %v1231_v42 = vsel %vm973_vm0, %v1203_v48, 0.0  ;;  %v3661_v8 = vpop.xlane.xlu1 %1647 }
 0x20a   : > { %1714 = vadd.xlane.f32.xlu0 %v1713_v18  ;;  %v897_v18 = vunpack.c.h.bf16 %v3560_v11 }
 0x20c   : > { %v1102_v48 = vmul.f32 %v897_v18, %v897_v18 }
 0x20d   : > { %1135 = vadd.xlane.f32.xlu1 %v1134_v46  ;;  %v1704_v46 = vmul.f32 %v3212_v34, %v899_v24  ;;  %v1731_v34 = vsel %vm973_vm0, %v1703_v41, 0.0  ;;  %v1101_v24 = vmul.f32 %v896_v2, %v896_v2 }
 0x20e   : > { %1132 = vadd.xlane.f32.xlu0 %v1131_v19  ;;  %v3663_v19 = vpop.xlane.xlu0 %1644  ;;  %v1128_v11 = vsel %vm973_vm0, %v1102_v48, 0.0  ;;  %v2845_v48 = vld [vmem:[%s3013_s16 + $0x20] sm:$0xff] }
 0x20f   : > { %v1734_v14 = vsel %vm973_vm0, %v1704_v46, 0.0  ;;  %v1125_v35 = vsel %vm973_vm0, %v1101_v24, 0.0 }
 0x211   : > { %1235 = vadd.xlane.f32.xlu1 %v1234_v56  ;;  %v3670_v56 = vpop.xlane.xlu1 %2035 }
 0x212   : > { %1232 = vadd.xlane.f32.xlu0 %v1231_v42  ;;  %4721 = vst [vmem:[#allocation39_spill] sm:$0xff] %v3670_v56  ;;  %v3672_v47 = vpop.xlane.xlu0 %2032  ;;  %v2842_v42 = vld [vmem:[%s3007_s13 + $0x28] sm:$0xff]  ;;  %v1401_v56 = vmul.f32 %v2845_v48, %v896_v2 }
 0x213   : > { %4722 = vst [vmem:[#allocation40_spill] sm:$0xff] %v3672_v47  ;;  %v1202_v49 = vmul.f32 %v2842_v42, %v897_v18  ;;  %v1702_v42 = vmul.f32 %v3200_v26, %v897_v18 }
 0x215   : > { %1435 = vadd.xlane.f32.xlu1 %v1434_v12  ;;  %v1201_v12 = vmul.f32 %v2843_v10, %v896_v2  ;;  %v1228_v46 = vsel %vm973_vm0, %v1202_v49, 0.0  ;;  %v902_v49 = vunpack.c.l.bf16 %v3587_v45  ;;  %v1701_v10 = vmul.f32 %v3203_v27, %v896_v2 }
 0x216   : > { %1432 = vadd.xlane.f32.xlu0 %v1431_v40  ;;  %v2844_v40 = vld [vmem:[%s3013_s16 + $0x28] sm:$0xff] }
 0x217   : > { %v1402_v41 = vmul.f32 %v2844_v40, %v897_v18  ;;  %v1225_v47 = vsel %vm973_vm0, %v1201_v12, 0.0  ;;  %v1107_v48 = vmul.f32 %v902_v49, %v902_v49 }
 0x219   : > { %1735 = vadd.xlane.f32.xlu1 %v1734_v14  ;;  %v3680_v14 = vpop.xlane.xlu1 %1353  ;;  %v1428_v24 = vsel %vm973_vm0, %v1402_v41, 0.0  ;;  %v1725_v41 = vsel %vm973_vm0, %v1701_v10, 0.0  ;;  %v1143_v2 = vsel %vm973_vm0, %v1107_v48, 0.0  ;;  %v1407_v10 = vmul.f32 %v3250_v52, %v902_v49 }
 0x21a   : > { %1732 = vadd.xlane.f32.xlu0 %v1731_v34  ;;  %v3682_v34 = vpop.xlane.xlu0 %1350  ;;  %v900_v48 = vunpack.c.l.bf16 %v3593_v39 }
 0x21b   : > { %4723 = vst [vmem:[#allocation41_spill] sm:$0xff] %v3682_v34 }
 0x21d   : > { %1129 = vadd.xlane.f32.xlu1 %v1128_v11  ;;  %v903_v11 = vunpack.c.h.bf16 %v3587_v45 }
 0x21e   : > { %1126 = vadd.xlane.f32.xlu0 %v1125_v35  ;;  %v1425_v35 = vsel %vm973_vm0, %v1401_v56, 0.0  ;;  %v3694_v12 = vpop.xlane.xlu0 %1356  ;;  %v1207_v56 = vmul.f32 %v3191_v17, %v902_v49 }
 0x21f   : > { %v1108_v40 = vmul.f32 %v903_v11, %v903_v11  ;;  %v1208_v45 = vmul.f32 %v3188_v16, %v903_v11  ;;  %v1708_v17 = vmul.f32 %v3341_v4, %v903_v11  ;;  %v1105_v4 = vmul.f32 %v900_v48, %v900_v48 }
 0x221   : > { %1229 = vadd.xlane.f32.xlu1 %v1228_v46  ;;  %v3692_v46 = vpop.xlane.xlu1 %1359  ;;  %v1146_v26 = vsel %vm973_vm0, %v1108_v40, 0.0  ;;  %v901_v40 = vunpack.c.h.bf16 %v3593_v39  ;;  %v1746_v52 = vsel %vm973_vm0, %v1708_v17, 0.0 }
 0x222   : > { %1226 = vadd.xlane.f32.xlu0 %v1225_v47  ;;  %v1728_v47 = vsel %vm973_vm0, %v1702_v42, 0.0  ;;  %v3702_v27 = vpop.xlane.xlu0 %1838  ;;  %v1408_v42 = vmul.f32 %v3242_v50, %v903_v11  ;;  %v1443_v50 = vsel %vm973_vm0, %v1407_v10, 0.0  ;;  %v2846_v11 = vld [vmem:[%s3007_s13 + $0x48] sm:$0xff] }
 0x225   : > { %1429 = vadd.xlane.f32.xlu1 %v1428_v24  ;;  %v3700_v18 = vpop.xlane.xlu1 %1841  ;;  %v1246_v24 = vsel %vm973_vm0, %v1208_v45, 0.0  ;;  %v1106_v45 = vmul.f32 %v901_v40, %v901_v40 }
 0x226   : > { %1426 = vadd.xlane.f32.xlu0 %v1425_v35  ;;  %v1243_v35 = vsel %vm973_vm0, %v1207_v56, 0.0 }
 0x227   : > { %v1140_v39 = vsel %vm973_vm0, %v1106_v45, 0.0 }
 0x229   : > { %1729 = vadd.xlane.f32.xlu1 %v1728_v47  ;;  %v3710_v16 = vpop.xlane.xlu1 %1847  ;;  %v3712_v47 = vpop.xlane.xlu0 %1844 }
 0x22a   : > { %1726 = vadd.xlane.f32.xlu0 %v1725_v41  ;;  %v1446_v41 = vsel %vm973_vm0, %v1408_v42, 0.0  ;;  %v1206_v42 = vmul.f32 %v2846_v11, %v901_v40 }
 0x22d   : > { %1147 = vadd.xlane.f32.xlu1 %v1146_v26  ;;  %v1707_v26 = vmul.f32 %v3344_v5, %v902_v49  ;;  %v3723_v56 = vpop.xlane.xlu0 %1550  ;;  %v2764_v5 = vld [vmem:[%s4670_s10] sm:$0xff]   ;;  %v1137_v49 = vsel %vm973_vm0, %v1105_v4, 0.0  ;;  %v907_v4 = vunpack.c.h.bf16 %v3616_v43 }
 0x22e   : > { %1144 = vadd.xlane.f32.xlu0 %v1143_v2  ;;  %v3721_v2 = vpop.xlane.xlu1 %1553  ;;  %4725 = vst [vmem:[#allocation43_spill] sm:$0xff] %v3723_v56  ;;  %2707 = vmatprep.subr.bf16.mxu1 %v2764_v5 }
 0x22f   : > { %4724 = vst [vmem:[#allocation42_spill] sm:$0xff] %v3721_v2  ;;  %2708 = vmatpush3.bf16.msra.mxu1 %v2764_v5 }
 0x231   : > { %1247 = vadd.xlane.f32.xlu1 %v1246_v24  ;;  %v1743_v24 = vsel %vm973_vm0, %v1707_v26, 0.0  ;;  %v3735_v17 = vpop.xlane.xlu0 %1938  ;;  %v2848_v26 = vld [vmem:[%s3013_s16 + $0x48] sm:$0xff] }
 0x232   : > { %1244 = vadd.xlane.f32.xlu0 %v1243_v35  ;;  %v2847_v35 = vld [vmem:[%s3007_s13 + $0x40] sm:$0xff] }
 0x233   : > { %v1205_v10 = vmul.f32 %v2847_v35, %v900_v48 }
 0x235   : > { %1447 = vadd.xlane.f32.xlu1 %v1446_v41  ;;  %v3733_v41 = vpop.xlane.xlu1 %1941  ;;  %v1237_v45 = vsel %vm973_vm0, %v1205_v10, 0.0  ;;  %v3746_v56 = vpop.xlane.xlu0 %1556  ;;  %v1705_v10 = vmul.f32 %v3332_v62, %v900_v48 }
 0x236   : > { %1444 = vadd.xlane.f32.xlu0 %v1443_v50  ;;  %v1240_v50 = vsel %vm973_vm0, %v1206_v42, 0.0  ;;  %v906_v42 = vunpack.c.l.bf16 %v3616_v43 }
 0x239   : > { %1747 = vadd.xlane.f32.xlu1 %v1746_v52  ;;  %v1406_v52 = vmul.f32 %v2848_v26, %v901_v40  ;;  %v3744_v35 = vpop.xlane.xlu1 %1559  ;;  %v1112_v26 = vmul.f32 %v907_v4, %v907_v4  ;;  %v3758_v43 = vpop.xlane.xlu0 %1944 }
 0x23a   : > { %1744 = vadd.xlane.f32.xlu0 %v1743_v24  ;;  %v2849_v24 = vld [vmem:[%s3013_s16 + $0x40] sm:$0xff] }
 0x23b   : > { %v1440_v11 = vsel %vm973_vm0, %v1406_v52, 0.0  ;;  %v2765_v52 = vld [vmem:[%s4670_s10 + $0x8] sm:$0xff]   ;;  %v1158_v62 = vsel %vm973_vm0, %v1112_v26, 0.0 }
 0x23c   : > { %2709 = vmatprep.subr.bf16.mxu1 %v2765_v52 }
 0x23d   : > { %1141 = vadd.xlane.f32.xlu1 %v1140_v39  ;;  %v1405_v39 = vmul.f32 %v2849_v24, %v900_v48  ;;  %2710 = vmatpush3.bf16.msra.mxu1 %v2765_v52  ;;  %v1212_v48 = vmul.f32 %v3314_v44, %v907_v4  ;;  %v2766_v24 = vld [vmem:[%s4670_s10 + $0x10] sm:$0xff]   ;;  %v2767_v44 = vld [vmem:[%s4670_s10 + $0x18] sm:$0xff]   ;;  %v905_v52 = vunpack.c.h.bf16 %v3618_v53 }
 0x23e   : > { %1138 = vadd.xlane.f32.xlu0 %v1137_v49  ;;  %v1706_v49 = vmul.f32 %v3329_v61, %v901_v40  ;;  %v1737_v61 = vsel %vm973_vm0, %v1705_v10, 0.0  ;;  %v1111_v40 = vmul.f32 %v906_v42, %v906_v42  ;;  %2711 = vmatprep.subr.bf16.mxu1 %v2766_v24 }
 0x23f   : > { %v1437_v5 = vsel %vm973_vm0, %v1405_v39, 0.0 }
 0x240   : > { %v1155_v39 = vsel %vm973_vm0, %v1111_v40, 0.0  ;;  %v1712_v40 = vmul.f32 %v3427_v36, %v907_v4 }
 0x241   : > { %1241 = vadd.xlane.f32.xlu1 %v1240_v50  ;;  %v1740_v50 = vsel %vm973_vm0, %v1706_v49, 0.0  ;;  %2712 = vmatpush3.bf16.msra.mxu1 %v2766_v24  ;;  %v1258_v49 = vsel %vm973_vm0, %v1212_v48, 0.0  ;;  %v904_v48 = vunpack.c.l.bf16 %v3618_v53 }
 0x242   : > { %1238 = vadd.xlane.f32.xlu0 %v1237_v45  ;;  %v3756_v45 = vpop.xlane.xlu1 %1947  ;;  %2713 = vmatprep.subr.bf16.mxu1 %v2767_v44 }
 0x245   : > { %1441 = vadd.xlane.f32.xlu1 %v1440_v11  ;;  %v1211_v11 = vmul.f32 %v3318_v13, %v906_v42  ;;  %v1411_v13 = vmul.f32 %v3374_v6, %v906_v42  ;;  %2714 = vmatpush3.bf16.msra.mxu1 %v2767_v44  ;;  %v2769_v44 = vld [vmem:[%s4670_s10 + $0x28] sm:$0xff]  }
 0x246   : > { %1438 = vadd.xlane.f32.xlu0 %v1437_v5  ;;  %v1412_v5 = vmul.f32 %v3371_v38, %v907_v4  ;;  %v3769_v10 = vpop.xlane.xlu1 %1653  ;;  %v1758_v4 = vsel %vm973_vm0, %v1712_v40, 0.0  ;;  %v2770_v40 = vld [vmem:[%s4670_s10 + $0x30] sm:$0xff]  }
 0x247   : > { %4726 = vst [vmem:[#allocation44_spill] sm:$0xff] %v3769_v10  ;;  %v1255_v26 = vsel %vm973_vm0, %v1211_v11, 0.0  ;;  %v1455_v24 = vsel %vm973_vm0, %v1411_v13, 0.0  ;;  %v1210_v13 = vmul.f32 %v3301_v21, %v905_v52  ;;  %v1410_v21 = vmul.f32 %v3353_v9, %v905_v52 }
 0x248   : > { %v1911_v9 = vmul.f32 %v3430_v37, %v3374_v6  ;;  %v1709_v6 = vmul.f32 %v3418_v22, %v904_v48 }
 0x249   : > { %1741 = vadd.xlane.f32.xlu1 %v1740_v50  ;;  %v3771_v50 = vpop.xlane.xlu0 %1650 }
 0x24a   : > { %1738 = vadd.xlane.f32.xlu0 %v1737_v61  ;;  %4727 = vst [vmem:[#allocation45_spill] sm:$0xff] %v3771_v50  ;;  %v1458_v61 = vsel %vm973_vm0, %v1412_v5, 0.0  ;;  %v3787_v11 = vpop.xlane.xlu1 %2041  ;;  %v1110_v5 = vmul.f32 %v905_v52, %v905_v52  ;;  %v2567_v50 = vld [vmem:[%s4668_s8 + $0x8] sm:$0xff]  }
 0x24b   : > { %v3893_v2 = vunpack.c.l.bf16 %v2567_v50 }
 0x24d   : > { %1159 = vadd.xlane.f32.xlu1 %v1158_v62  ;;  %v2768_v62 = vld [vmem:[%s4670_s10 + $0x20] sm:$0xff]  }
 0x24e   : > { %1156 = vadd.xlane.f32.xlu0 %v1155_v39  ;;  %v1711_v39 = vmul.f32 %v3430_v37, %v906_v42  ;;  %2715 = vmatprep.subr.bf16.mxu1 %v2768_v62  ;;  %v1152_v42 = vsel %vm973_vm0, %v1110_v5, 0.0  ;;  %v2771_v5 = vld [vmem:[%s4670_s10 + $0x38] sm:$0xff]  }
 0x24f   : > { %2716 = vmatpush3.bf16.msra.mxu1 %v2768_v62 }
 0x250   : > { %v1755_v53 = vsel %vm973_vm0, %v1711_v39, 0.0  ;;  %2717 = vmatprep.subr.bf16.mxu1 %v2769_v44  ;;  %v1209_v39 = vmul.f32 %v3304_v23, %v904_v48  ;;  %v1912_v23 = vmul.f32 %v3427_v36, %v3371_v38  ;;  %v1710_v38 = vmul.f32 %v3415_v20, %v905_v52 }
 0x251   : > { %1259 = vadd.xlane.f32.xlu1 %v1258_v49  ;;  %v3789_v49 = vpop.xlane.xlu0 %2038 }
 0x252   : > { %1256 = vadd.xlane.f32.xlu0 %v1255_v26  ;;  %v1109_v26 = vmul.f32 %v904_v48, %v904_v48 }
 0x253   : > { %2718 = vmatpush3.bf16.msra.mxu1 %v2769_v44  ;;  %v1249_v44 = vsel %vm973_vm0, %v1209_v39, 0.0 }
 0x254   : > { %2719 = vmatprep.subr.bf16.mxu1 %v2770_v40 }
 0x255   : > { %1459 = vadd.xlane.f32.xlu1 %v1458_v61  ;;  %v3798_v61 = vpop.xlane.xlu1 %1659  ;;  %v3800_v62 = vpop.xlane.xlu0 %1656 }
 0x256   : > { %1456 = vadd.xlane.f32.xlu0 %v1455_v24  ;;  %v1149_v24 = vsel %vm973_vm0, %v1109_v26, 0.0 }
 0x257   : > { %2720 = vmatpush3.bf16.msra.mxu1 %v2770_v40 }
 0x258   : > { %2721 = vmatprep.subr.bf16.mxu1 %v2771_v5 }
 0x259   : > { %1759 = vadd.xlane.f32.xlu1 %v1758_v4  ;;  %v1252_v4 = vsel %vm973_vm0, %v1210_v13, 0.0  ;;  %v3816_v26 = vpop.xlane.xlu1 %2047  ;;  %v1452_v13 = vsel %vm973_vm0, %v1410_v21, 0.0  ;;  %v2010_v21 = vmul.f32 %v3415_v20, %v3415_v20 }
 0x25a   : > { %1756 = vadd.xlane.f32.xlu0 %v1755_v53  ;;  %v1409_v53 = vmul.f32 %v3356_v15, %v904_v48  ;;  %4728 = vst [vmem:[#allocation46_spill] sm:$0xff] %v3816_v26  ;;  %v1958_v15 = vsel %vm973_vm0, %v1912_v23, 0.0  ;;  %v2012_v48 = vmul.f32 %v3427_v36, %v3427_v36 }
 0x25b   : > { %2722 = vmatpush3.bf16.msra.mxu1 %v2771_v5  ;;  %v2009_v5 = vmul.f32 %v3418_v22, %v3418_v22  ;;  %v2052_v52 = vsel %vm973_vm0, %v2010_v21, 0.0  ;;  %v2011_v22 = vmul.f32 %v3430_v37, %v3430_v37 }
 0x25c   : > { %v1449_v40 = vsel %vm973_vm0, %v1409_v53, 0.0  ;;  %v1749_v53 = vsel %vm973_vm0, %v1709_v6, 0.0 }
 0x25d   : > { %1153 = vadd.xlane.f32.xlu1 %v1152_v42  ;;  %v3818_v42 = vpop.xlane.xlu0 %2044  ;;  %v3827_v39 = vpop.xlane.xlu1 %1853  ;;  %v2049_v20 = vsel %vm973_vm0, %v2009_v5, 0.0 }
 0x25e   : > { %1150 = vadd.xlane.f32.xlu0 %v1149_v24  ;;  %4729 = vst [vmem:[#allocation47_spill] sm:$0xff] %v3818_v42  ;;  %v1955_v24 = vsel %vm973_vm0, %v1911_v9, 0.0  ;;  %4730 = vst [vmem:[#allocation48_spill] sm:$0xff] %v3827_v39 }
 0x261   : > { %1253 = vadd.xlane.f32.xlu1 %v1252_v4  ;;  %v3829_v4 = vpop.xlane.xlu0 %1850  ;;  %v3839_v23 = vpop.xlane.xlu1 %1859 }
 0x262   : > { %1250 = vadd.xlane.f32.xlu0 %v1249_v44  ;;  %4731 = vst [vmem:[#allocation49_spill] sm:$0xff] %v3829_v4  ;;  %v1752_v44 = vsel %vm973_vm0, %v1710_v38, 0.0 }
 0x265   : > { %1453 = vadd.xlane.f32.xlu1 %v1452_v13  ;;  %v3841_v9 = vpop.xlane.xlu0 %1856  ;;  %v2058_v13 = vsel %vm973_vm0, %v2012_v48, 0.0 }
 0x266   : > { %1450 = vadd.xlane.f32.xlu0 %v1449_v40  ;;  %v2055_v40 = vsel %vm973_vm0, %v2011_v22, 0.0 }
 0x269   : > { %1959 = vadd.xlane.f32.xlu1 %v1958_v15  ;;  %v3850_v15 = vpop.xlane.xlu1 %1953 }
 0x26a   : > { %1956 = vadd.xlane.f32.xlu0 %v1955_v24  ;;  %4732 = vst [vmem:[#allocation50_spill] sm:$0xff] %v3850_v15  ;;  %v3852_v24 = vpop.xlane.xlu0 %1950 }
 0x26b   : > { %4733 = vst [vmem:[#allocation51_spill] sm:$0xff] %v3852_v24 }
 0x26d   : > { %1753 = vadd.xlane.f32.xlu1 %v1752_v44 }
 0x26e   : > { %1750 = vadd.xlane.f32.xlu0 %v1749_v53 }
 0x271   : > { %2053 = vadd.xlane.f32.xlu1 %v2052_v52 }
 0x272   : > { %2050 = vadd.xlane.f32.xlu0 %v2049_v20 }
 0x275   : > { %2059 = vadd.xlane.f32.xlu1 %v2058_v13 }
 0x276   : > { %2056 = vadd.xlane.f32.xlu0 %v2055_v40  ;;  %v1161_v40 = vlaneseq }
 0x278   : > { %v3884_v4 = vshrl.u32 %v1161_v40, 7 }
 0x27a   : > { %v3854_v38 = vpop.xlane.xlu0 %1220  ;;  %v3856_v36 = vpop.xlane.xlu1 %1120  ;;  %v1363_v42 = vsub.s32 2, %v3884_v4  ;;  %v1563_v34 = vsub.s32 4, %v3884_v4 }
 0x27e   : > { %v3858_v6 = vpop.xlane.xlu0 %1420  ;;  %v3860_v21 = vpop.xlane.xlu1 %1123 }
 0x282   : > { %v3862_v37 = vpop.xlane.xlu0 %1720  ;;  %v3864_v5 = vpop.xlane.xlu1 %1223 }
 0x286   : > { %v3866_v44 = vpop.xlane.xlu1 %1423 }
 0x287   : > { %v3868_v53 = vpop.xlane.xlu0 %1114 }
 0x28a   : > { %v3870_v52 = vpop.xlane.xlu1 %1723 }
 0x28b   : > { %v3872_v48 = vpop.xlane.xlu0 %1117 }
 0x28c   : > { %4734 = vst [vmem:[#allocation52_spill] sm:$0xff] %v3872_v48 }
 0x28e   : > { %v3874_v20 = vpop.xlane.xlu1 %1217 }
 0x28f   : > { %4735 = vst [vmem:[#allocation53_spill] sm:$0xff] %v3874_v20  ;;  %v3876_v22 = vpop.xlane.xlu0 %1214 }
 0x290   : > { %4736 = vst [vmem:[#allocation54_spill] sm:$0xff] %v3876_v22  ;;  %v2566_v22 = vunpack.c.h.bf16 %v2567_v50 }
 0x292   : > { %v3878_v13 = vpop.xlane.xlu1 %1417 }
 0x293   : > { %4737 = vst [vmem:[#allocation55_spill] sm:$0xff] %v3878_v13  ;;  %v3880_v24 = vpop.xlane.xlu0 %1414  ;;  %v3908_v13 = vrot.slane %v3893_v2, %v1563_v34 }
 0x294   : > { %4738 = vst [vmem:[#allocation56_spill] sm:$0xff] %v3880_v24 }
 0x295   : > { %4746 = vst [vmem:[#allocation64_spill] sm:$0xff] %v3908_v13  ;;  %v3949_v34 = vmul.f32 %v3908_v13, %v3459_v60 }
 0x296   : > { %v3882_v15 = vpop.xlane.xlu1 %1717 }
 0x297   : > { %4739 = vst [vmem:[#allocation57_spill] sm:$0xff] %v3882_v15  ;;  %v3886_v39 = vpop.xlane.xlu0 %1714  ;;  %v1663_v15 = vsub.s32 5, %v3884_v4  ;;  %4755 = vst [vmem:[#allocation73_spill] sm:$0xff] %v3949_v34 }
 0x298   : > { %4740 = vst [vmem:[#allocation58_spill] sm:$0xff] %v3886_v39  ;;  %v3903_v39 = vrot.slane %v3893_v2, %v1363_v42 }
 0x29a   : > { %v3891_v10 = vpop.xlane.xlu1 %1135  ;;  %4744 = vst [vmem:[#allocation62_spill] sm:$0xff] %v3903_v39  ;;  %v3923_v42 = vmul.f32 %v3903_v39, %v3449_v30  ;;  %v3930_v50 = vmul.f32 %v3903_v39, %v3451_v55  ;;  %v3945_v30 = vmul.f32 %v3908_v13, %v3457_v59  ;;  %v3953_v55 = vmul.f32 %v3908_v13, %v3461_v51 }
 0x29b   : > { %4741 = vst [vmem:[#allocation59_spill] sm:$0xff] %v3891_v10  ;;  %v3896_v26 = vpop.xlane.xlu0 %1132  ;;  %v1863_v10 = vsub.s32 7, %v3884_v4 }
 0x29c   : > { %4742 = vst [vmem:[#allocation60_spill] sm:$0xff] %v3896_v26  ;;  %v3913_v26 = vrot.slane %v3893_v2, %v1663_v15  ;;  %4749 = vst [vmem:[#allocation67_spill] sm:$0xff] %v3923_v42  ;;  %v3934_v15 = vmul.f32 %v3903_v39, %v3453_v31  ;;  %v4757_v31 = vsub.s32 0, %v3884_v4 }
 0x29d   : > { %4750 = vst [vmem:[#allocation68_spill] sm:$0xff] %v3930_v50  ;;  %v3941_v20 = vrot.slane %v3893_v2, %v1863_v10  ;;  %4754 = vst [vmem:[#allocation72_spill] sm:$0xff] %v3945_v30  ;;  %v4761_v10 = vld [vmem:[#allocation2_spill] sm:$0xff]  ;;  %v4783_v50 = vld [vmem:[#allocation12_spill] sm:$0xff] }
 0x29e   : > { %v3900_v40 = vpop.xlane.xlu1 %1235  ;;  %4747 = vst [vmem:[#allocation65_spill] sm:$0xff] %v3913_v26  ;;  %4751 = vst [vmem:[#allocation69_spill] sm:$0xff] %v3934_v15  ;;  %v3965_v59 = vmul.f32 %v3913_v26, %v3465_v0  ;;  %v3969_v60 = vmul.f32 %v3913_v26, %v4761_v10  ;;  %v4769_v0 = vld [vmem:[#allocation6_spill] sm:$0xff]  ;;  %v4771_v10 = vsub.s32 1, %v3884_v4  ;;  %v4815_v15 = vld [vmem:[#allocation28_spill] sm:$0xff] }
 0x29f   : > { %4743 = vst [vmem:[#allocation61_spill] sm:$0xff] %v3900_v40  ;;  %v3905_v24 = vpop.xlane.xlu0 %1232  ;;  %v3919_v40 = vmul.f32 %v3903_v39, %v3447_v54  ;;  %v3938_v54 = vmul.f32 %v3908_v13, %v3455_v58  ;;  %4753 = vst [vmem:[#allocation71_spill] sm:$0xff] %v3941_v20  ;;  %v3961_v58 = vmul.f32 %v3913_v26, %v3463_v63  ;;  %v4767_v63 = vld [vmem:[#allocation5_spill] sm:$0xff] }
 0x2a0   : > { %4745 = vst [vmem:[#allocation63_spill] sm:$0xff] %v3905_v24  ;;  %4756 = vst [vmem:[#allocation74_spill] sm:$0xff] %v3953_v55 }
 0x2a1   : > { %4748 = vst [vmem:[#allocation66_spill] sm:$0xff] %v3919_v40  ;;  %4752 = vst [vmem:[#allocation70_spill] sm:$0xff] %v3938_v54  ;;  %v3957_v40 = vrot.slane %v2566_v22, %v4757_v31  ;;  %v4763_v54 = vld [vmem:[#allocation3_spill] sm:$0xff]  ;;  %v4765_v31 = vld [vmem:[#allocation4_spill] sm:$0xff] }
 0x2a2   : > { %v3915_v48 = vpop.xlane.xlu1 %1435  ;;  %4759 = vst [vmem:[#allocation76_spill] sm:$0xff] %v3961_v58  ;;  %4760 = vst [vmem:[#allocation77_spill] sm:$0xff] %v3965_v59  ;;  %v3973_v51 = vmul.f32 %v3913_v26, %v4763_v54  ;;  %v3979_v30 = vmul.f32 %v3903_v39, %v4765_v31  ;;  %v3983_v58 = vmul.f32 %v3903_v39, %v4767_v63  ;;  %v4775_v31 = vld [vmem:[#allocation8_spill] sm:$0xff]  ;;  %v4777_v63 = vld [vmem:[#allocation9_spill] sm:$0xff] }
 0x2a3   : > { %v3926_v24 = vpop.xlane.xlu0 %1432  ;;  %4758 = vst [vmem:[#allocation75_spill] sm:$0xff] %v3957_v40  ;;  %4762 = vst [vmem:[#allocation2_spill] sm:$0xff] %v3969_v60  ;;  %v3987_v59 = vmul.f32 %v3903_v39, %v4769_v0  ;;  %v3991_v60 = vrot.slane %v2566_v22, %v4771_v10  ;;  %v4779_v0 = vld [vmem:[#allocation10_spill] sm:$0xff]  ;;  %v4781_v22 = vld [vmem:[#allocation11_spill] sm:$0xff] }
 0x2a4   : > { %4764 = vst [vmem:[#allocation3_spill] sm:$0xff] %v3973_v51  ;;  %4766 = vst [vmem:[#allocation4_spill] sm:$0xff] %v3979_v30  ;;  %v4773_v51 = vld [vmem:[#allocation7_spill] sm:$0xff]  ;;  %v4001_v30 = vmul.f32 %v3941_v20, %v4775_v31  ;;  %v4013_v10 = vmul.f32 %v3941_v20, %v4781_v22 }
 0x2a5   : > { %4768 = vst [vmem:[#allocation5_spill] sm:$0xff] %v3983_v58  ;;  %4770 = vst [vmem:[#allocation6_spill] sm:$0xff] %v3987_v59  ;;  %v3997_v55 = vmul.f32 %v3903_v39, %v4773_v51  ;;  %v4005_v58 = vmul.f32 %v3941_v20, %v4777_v63  ;;  %v4009_v59 = vmul.f32 %v3941_v20, %v4779_v0 }
 0x2a6   : > { %v3975_v34 = vpop.xlane.xlu1 %1735  ;;  %4772 = vst [vmem:[#allocation78_spill] sm:$0xff] %v3991_v60  ;;  %4776 = vst [vmem:[#allocation8_spill] sm:$0xff] %v4001_v30  ;;  %v4017_v51 = vmul.f32 %v3908_v13, %v4783_v50  ;;  %v4787_v30 = vld [vmem:[#allocation14_spill] sm:$0xff] }
 0x2a7   : > { %v3993_v54 = vpop.xlane.xlu0 %1732  ;;  %4774 = vst [vmem:[#allocation7_spill] sm:$0xff] %v3997_v55  ;;  %4778 = vst [vmem:[#allocation9_spill] sm:$0xff] %v4005_v58  ;;  %v4785_v55 = vld [vmem:[#allocation13_spill] sm:$0xff]  ;;  %v4025_v63 = vmul.f32 %v3957_v40, %v4787_v30  ;;  %v4789_v58 = vld [vmem:[#allocation15_spill] sm:$0xff] }
 0x2a8   : > { %4780 = vst [vmem:[#allocation10_spill] sm:$0xff] %v4009_v59  ;;  %4782 = vst [vmem:[#allocation11_spill] sm:$0xff] %v4013_v10  ;;  %v4021_v31 = vmul.f32 %v3908_v13, %v4785_v55  ;;  %v4029_v0 = vmul.f32 %v3957_v40, %v4789_v58  ;;  %v4791_v59 = vld [vmem:[#allocation16_spill] sm:$0xff]  ;;  %v4793_v10 = vld [vmem:[#allocation17_spill] sm:$0xff] }
 0x2a9   : > { %4784 = vst [vmem:[#allocation12_spill] sm:$0xff] %v4017_v51  ;;  %4788 = vst [vmem:[#allocation14_spill] sm:$0xff] %v4025_v63  ;;  %v4033_v22 = vmul.f32 %v3908_v13, %v4791_v59  ;;  %v4037_v50 = vmul.f32 %v3908_v13, %v4793_v10  ;;  %v4795_v51 = vld [vmem:[#allocation18_spill] sm:$0xff]  ;;  %v4797_v30 = vld [vmem:[#allocation19_spill] sm:$0xff] }
 0x2aa   : > { %4786 = vst [vmem:[#allocation13_spill] sm:$0xff] %v4021_v31  ;;  %4790 = vst [vmem:[#allocation15_spill] sm:$0xff] %v4029_v0  ;;  %v4041_v55 = vmul.f32 %v3957_v40, %v4795_v51  ;;  %v4043_v31 = vpop.xlane.xlu1 %1129  ;;  %v4047_v63 = vmul.f32 %v3957_v40, %v4797_v30  ;;  %v4799_v58 = vld [vmem:[#allocation20_spill] sm:$0xff]  ;;  %v4801_v59 = vld [vmem:[#allocation21_spill] sm:$0xff] }
 0x2ab   : > { %4792 = vst [vmem:[#allocation16_spill] sm:$0xff] %v4033_v22  ;;  %4794 = vst [vmem:[#allocation17_spill] sm:$0xff] %v4037_v50  ;;  %v4051_v0 = vmul.f32 %v3913_v26, %v4799_v58  ;;  %v4055_v22 = vmul.f32 %v3913_v26, %v4801_v59  ;;  %v4803_v10 = vld [vmem:[#allocation22_spill] sm:$0xff]  ;;  %v4061_v51 = vpop.xlane.xlu0 %1126  ;;  %v4807_v30 = vld [vmem:[#allocation24_spill] sm:$0xff] }
 0x2ac   : > { %4796 = vst [vmem:[#allocation18_spill] sm:$0xff] %v4041_v55  ;;  %4798 = vst [vmem:[#allocation19_spill] sm:$0xff] %v4047_v63  ;;  %v4059_v50 = vmul.f32 %v3991_v60, %v4803_v10  ;;  %v4805_v55 = vld [vmem:[#allocation23_spill] sm:$0xff]  ;;  %v4069_v63 = vmul.f32 %v3913_v26, %v4807_v30  ;;  %v4809_v58 = vld [vmem:[#allocation25_spill] sm:$0xff] }
 0x2ad   : > { %4800 = vst [vmem:[#allocation20_spill] sm:$0xff] %v4051_v0  ;;  %4802 = vst [vmem:[#allocation21_spill] sm:$0xff] %v4055_v22  ;;  %v4065_v42 = vmul.f32 %v3991_v60, %v4805_v55  ;;  %v4073_v0 = vmul.f32 %v3913_v26, %v4809_v58  ;;  %v4811_v59 = vld [vmem:[#allocation26_spill] sm:$0xff]  ;;  %v4813_v10 = vld [vmem:[#allocation27_spill] sm:$0xff]  ;;  %v4085_v55 = vmul.f32 %v3903_v39, %v4815_v15 }
 0x2ae   : > { %4804 = vst [vmem:[#allocation22_spill] sm:$0xff] %v4059_v50  ;;  %4808 = vst [vmem:[#allocation24_spill] sm:$0xff] %v4069_v63  ;;  %v4077_v22 = vmul.f32 %v3991_v60, %v4811_v59  ;;  %v4081_v50 = vmul.f32 %v3991_v60, %v4813_v10  ;;  %v4819_v63 = vld [vmem:[#allocation30_spill] sm:$0xff] }
 0x2af   : > { %4806 = vst [vmem:[#allocation23_spill] sm:$0xff] %v4065_v42  ;;  %4810 = vst [vmem:[#allocation25_spill] sm:$0xff] %v4073_v0  ;;  %v4817_v42 = vld [vmem:[#allocation29_spill] sm:$0xff]  ;;  %v4093_v58 = vmul.f32 %v3903_v39, %v4819_v63  ;;  %v4821_v0 = vld [vmem:[#allocation31_spill] sm:$0xff] }
 0x2b0   : > { %4812 = vst [vmem:[#allocation26_spill] sm:$0xff] %v4077_v22  ;;  %4814 = vst [vmem:[#allocation27_spill] sm:$0xff] %v4081_v50  ;;  %v4089_v30 = vmul.f32 %v3903_v39, %v4817_v42  ;;  %v4097_v59 = vmul.f32 %v3903_v39, %v4821_v0  ;;  %v4823_v22 = vld [vmem:[#allocation32_spill] sm:$0xff]  ;;  %v4825_v50 = vld [vmem:[#allocation33_spill] sm:$0xff]  ;;  %v4119_v0 = vmul.f32 %v3908_v13, %v3563_v32 }
 0x2b1   : > { %4816 = vst [vmem:[#allocation28_spill] sm:$0xff] %v4085_v55  ;;  %4820 = vst [vmem:[#allocation30_spill] sm:$0xff] %v4093_v58  ;;  %v4101_v10 = vmul.f32 %v3941_v20, %v4823_v22  ;;  %v4105_v15 = vmul.f32 %v3941_v20, %v4825_v50  ;;  %v4827_v55 = vld [vmem:[#allocation34_spill] sm:$0xff]  ;;  %v4829_v63 = vld [vmem:[#allocation35_spill] sm:$0xff]  ;;  %v4141_v32 = vmul.f32 %v3908_v13, %v3611_v3 }
 0x2b2   : > { %4818 = vst [vmem:[#allocation29_spill] sm:$0xff] %v4089_v30  ;;  %4822 = vst [vmem:[#allocation31_spill] sm:$0xff] %v4097_v59  ;;  %v4109_v42 = vmul.f32 %v3941_v20, %v4827_v55  ;;  %v4111_v30 = vpop.xlane.xlu1 %1229  ;;  %v4115_v58 = vmul.f32 %v3941_v20, %v4829_v63  ;;  %v4831_v22 = vld [vmem:[#allocation36_spill] sm:$0xff]  ;;  %v4832_v50 = vld [vmem:[#allocation37_spill] sm:$0xff]  ;;  %v4129_v55 = vpop.xlane.xlu0 %1226  ;;  %v4137_v63 = vmul.f32 %v3908_v13, %v3609_v33 }
 0x2b3   : > { %4824 = vst [vmem:[#allocation32_spill] sm:$0xff] %v4101_v10  ;;  %4826 = vst [vmem:[#allocation33_spill] sm:$0xff] %v4105_v15  ;;  %v4123_v10 = vmul.f32 %v3908_v13, %v4831_v22  ;;  %v4127_v15 = vmul.f32 %v3957_v40, %v4832_v50  ;;  %v4145_v22 = vmul.f32 %v3957_v40, %v3627_v25 }
 0x2b4   : > { %4828 = vst [vmem:[#allocation34_spill] sm:$0xff] %v4109_v42  ;;  %4830 = vst [vmem:[#allocation35_spill] sm:$0xff] %v4115_v58  ;;  %v4834_v42 = vld [vmem:[#allocation38_spill] sm:$0xff]  ;;  %v4149_v50 = vmul.f32 %v3957_v40, %v3629_v1  ;;  %v4157_v33 = vmul.f32 %v3913_v26, %v3643_v29  ;;  %v4161_v3 = vmul.f32 %v3991_v60, %v3650_v7  ;;  %v4840_v7 = vld [vmem:[#allocation39_spill] sm:$0xff] }
 0x2b5   : > { %4833 = vst [vmem:[#allocation36_spill] sm:$0xff] %v4127_v15  ;;  %v4133_v59 = vmul.f32 %v3957_v40, %v4834_v42  ;;  %4836 = vst [vmem:[#allocation38_spill] sm:$0xff] %v4145_v22  ;;  %v4153_v42 = vmul.f32 %v3913_v26, %v3641_v57  ;;  %v4165_v25 = vmul.f32 %v3991_v60, %v3652_v28  ;;  %v1463_v22 = vsub.s32 3, %v3884_v4  ;;  %v4842_v28 = vld [vmem:[#allocation40_spill] sm:$0xff] }
 0x2b6   : > { %4837 = vst [vmem:[#allocation79_spill] sm:$0xff] %v4149_v50  ;;  %4838 = vst [vmem:[#allocation80_spill] sm:$0xff] %v4161_v3  ;;  %v4169_v1 = vmul.f32 %v3913_v26, %v3661_v8  ;;  %v1763_v57 = vsub.s32 6, %v3884_v4  ;;  %v4173_v50 = vpop.xlane.xlu1 %1429  ;;  %v4177_v29 = vmul.f32 %v3913_v26, %v3663_v19  ;;  %v4181_v3 = vmul.f32 %v3991_v60, %v4840_v7  ;;  %v4191_v15 = vpop.xlane.xlu0 %1426 }
 0x2b7   : > { %4835 = vst [vmem:[#allocation37_spill] sm:$0xff] %v4133_v59  ;;  %4839 = vst [vmem:[#allocation81_spill] sm:$0xff] %v4165_v25  ;;  %v4185_v25 = vmul.f32 %v3991_v60, %v4842_v28  ;;  %v4189_v8 = vmul.f32 %v3903_v39, %v3680_v14  ;;  %v4195_v58 = vmul.f32 %v3903_v39, %v3692_v46 }
 0x2b8   : > { %4841 = vst [vmem:[#allocation39_spill] sm:$0xff] %v4181_v3  ;;  %v4199_v19 = vmul.f32 %v3903_v39, %v3694_v12  ;;  %v4203_v7 = vmul.f32 %v3941_v20, %v3700_v18  ;;  %v4207_v28 = vmul.f32 %v3941_v20, %v3702_v27  ;;  %v4211_v14 = vmul.f32 %v3941_v20, %v3710_v16  ;;  %v4869_v3 = vld [vmem:[#allocation59_spill] sm:$0xff] }
 0x2b9   : > { %4843 = vst [vmem:[#allocation40_spill] sm:$0xff] %v4185_v25  ;;  %4844 = vst [vmem:[#allocation82_spill] sm:$0xff] %v4189_v8  ;;  %v4215_v46 = vmul.f32 %v3941_v20, %v3712_v47  ;;  %v4849_v8 = vsub.s32 1, %v3884_v4  ;;  %v4850_v18 = vsub.s32 0, %v3884_v4  ;;  %v4229_v27 = vmul.f32 %v3957_v40, %v3733_v41 }
 0x2ba   : > { %4845 = vst [vmem:[#allocation83_spill] sm:$0xff] %v4195_v58  ;;  %4846 = vst [vmem:[#allocation84_spill] sm:$0xff] %v4199_v19  ;;  %v4233_v16 = vmul.f32 %v3957_v40, %v3735_v17  ;;  %v4236_v47 = vrot.slane %v3893_v2, %v1463_v22  ;;  %v4243_v4 = vmul.f32 %v3908_v13, %v3744_v35  ;;  %v1727_v22 = vpop.xlane.xlu0 %1726 }
 0x2bb   : > { %4847 = vst [vmem:[#allocation85_spill] sm:$0xff] %v4211_v14  ;;  %4848 = vst [vmem:[#allocation86_spill] sm:$0xff] %v4215_v46  ;;  %v4220_v12 = vrot.slane %v3893_v2, %v4849_v8  ;;  %v4225_v39 = vrot.slane %v3893_v2, %v4850_v18  ;;  %v4239_v14 = vrot.slane %v3893_v2, %v1763_v57  ;;  %v1730_v8 = vpop.xlane.xlu1 %1729  ;;  %v4868_v46 = vld [vmem:[#allocation58_spill] sm:$0xff] }
 0x2bc   : > { %4851 = vst [vmem:[#allocation87_spill] sm:$0xff] %v4229_v27  ;;  %4852 = vst [vmem:[#allocation88_spill] sm:$0xff] %v4243_v4  ;;  %v4247_v18 = vmul.f32 %v3908_v13, %v3746_v56  ;;  %v4251_v41 = vmul.f32 %v3957_v40, %v3756_v45  ;;  %v4255_v17 = vmul.f32 %v3957_v40, %v3758_v43  ;;  %v4864_v13 = vld [vmem:[#allocation54_spill] sm:$0xff] }
 0x2bd   : > { %v4259_v2 = vmul.f32 %v3991_v60, %v3787_v11  ;;  %v4263_v35 = vmul.f32 %v3991_v60, %v3789_v49  ;;  %v4267_v56 = vmul.f32 %v3913_v26, %v3798_v61  ;;  %v4271_v45 = vmul.f32 %v3913_v26, %v3800_v62  ;;  %v4863_v26 = vld [vmem:[#allocation53_spill] sm:$0xff] }
 0x2be   : > { %4853 = vst [vmem:[#allocation89_spill] sm:$0xff] %v4247_v18  ;;  %4854 = vst [vmem:[#allocation90_spill] sm:$0xff] %v4251_v41  ;;  %v4275_v43 = vmul.f32 %v3941_v20, %v3839_v23  ;;  %v4279_v11 = vmul.f32 %v3941_v20, %v3841_v9  ;;  %v1267_v49 = vmul.f32 %v4220_v12, %v3854_v38 }
 0x2bf   : > { %4855 = vst [vmem:[#allocation91_spill] sm:$0xff] %v4255_v17  ;;  %4856 = vst [vmem:[#allocation92_spill] sm:$0xff] %v4259_v2  ;;  %v1167_v57 = vmul.f32 %v4225_v39, %v3856_v36  ;;  %v1467_v61 = vmul.f32 %v4236_v47, %v3858_v6  ;;  %v1168_v62 = vmul.f32 %v4225_v39, %v3860_v21  ;;  %v1148_v40 = vpop.xlane.xlu1 %1147  ;;  %v4862_v21 = vld [vmem:[#allocation52_spill] sm:$0xff] }
 0x2c0   : > { %4857 = vst [vmem:[#allocation93_spill] sm:$0xff] %v4263_v35  ;;  %4858 = vst [vmem:[#allocation94_spill] sm:$0xff] %v4267_v56  ;;  %v4291_v23 = vmul.f32 %v4239_v14, %v3862_v37  ;;  %v1268_v9 = vmul.f32 %v4220_v12, %v3864_v5  ;;  %v4297_v38 = vmul.f32 %v4236_v47, %v3866_v44  ;;  %v1145_v37 = vpop.xlane.xlu0 %1144  ;;  %v4310_v5 = vld [vmem:[%s4669_s9] ss:$0 sm:$0xff] }
 0x2c1   : > { %4859 = vst [vmem:[#allocation95_spill] sm:$0xff] %v4271_v45  ;;  %4860 = vst [vmem:[#allocation96_spill] sm:$0xff] %v4275_v43  ;;  %v1165_v36 = vmul.f32 %v4225_v39, %v3868_v53  ;;  %v4303_v6 = vmul.f32 %v4239_v14, %v3870_v52  ;;  %v1166_v20 = vmul.f32 %v4225_v39, %v4862_v21  ;;  %v4865_v53 = vld [vmem:[#allocation55_spill] sm:$0xff]  ;;  %v4866_v52 = vld [vmem:[#allocation56_spill] sm:$0xff] }
 0x2c2   : > { %4861 = vst [vmem:[#allocation97_spill] sm:$0xff] %v4279_v11  ;;  %v1266_v44 = vmul.f32 %v4220_v12, %v4863_v26  ;;  %v1265_v41 = vmul.f32 %v4220_v12, %v4864_v13  ;;  %v4318_v17 = vmul.f32 %v4236_v47, %v4865_v53  ;;  %v1465_v60 = vmul.f32 %v4236_v47, %v4866_v52  ;;  %v4867_v21 = vld [vmem:[#allocation57_spill] sm:$0xff]  ;;  %v4870_v13 = vld [vmem:[#allocation60_spill] sm:$0xff]  ;;  %v2693_v53 = vpop.f32.mrb[16].mxu0  ;;  %v4872_v52 = vld [vmem:[#allocation63_spill] sm:$0xff] }
 0x2c3   : > { %v4324_v11 = vmul.f32 %v4239_v14, %v4867_v21  ;;  %v4328_v43 = vmul.f32 %v4239_v14, %v4868_v46  ;;  %v4332_v26 = vmul.f32 %v4225_v39, %v4869_v3  ;;  %v1171_v25 = vmul.f32 %v4225_v39, %v4870_v13  ;;  %v4871_v45 = vld [vmem:[#allocation61_spill] sm:$0xff]  ;;  %v1032_v3 = vpop.f32.mrb[17].mxu0  ;;  %v1248_v35 = vpop.xlane.xlu1 %1247 }
 0x2c4   : > { %v4338_v2 = vmul.f32 %v4220_v12, %v4871_v45  ;;  %v4342_v21 = vmul.f32 %v4220_v12, %v4872_v52  ;;  %v4346_v46 = vmul.f32 %v4236_v47, %v3915_v48  ;;  %v1041_v56 = vadd.f32 %v2693_v53, %v4310_v5  ;;  %v1245_v48 = vpop.xlane.xlu0 %1244  ;;  %v2694_v4 = vpop.f32.mrb[18].mxu0 }
 0x2c5   : > { %v4351_v13 = vmul.f32 %v4236_v47, %v3926_v24  ;;  %v4355_v45 = vmul.f32 %v4239_v14, %v3975_v34  ;;  %v4359_v52 = vmul.f32 %v4239_v14, %v3993_v54  ;;  %v1033_v18 = vadd.f32 %v4310_v5, %v1032_v3  ;;  %v1035_v19 = vpop.f32.mrb[19].mxu0 }
 0x2c6   : > { %v1170_v53 = vmul.f32 %v4225_v39, %v4043_v31  ;;  %v1169_v59 = vmul.f32 %v4225_v39, %v4061_v51  ;;  %v1183_v24 = vadd.f32 %v1167_v57, %v1041_v56  ;;  %v1044_v27 = vadd.f32 %v2694_v4, %v4310_v5 }
 0x2c7   : > { %4873 = vst [vmem:[#allocation52_spill] sm:$0xff] %v4355_v45  ;;  %4874 = vst [vmem:[#allocation53_spill] sm:$0xff] %v4359_v52  ;;  %v4369_v34 = vmul.f32 %v4220_v12, %v4111_v30  ;;  %v1269_v54 = vmul.f32 %v4220_v12, %v4129_v55  ;;  %v1181_v3 = vadd.f32 %v1165_v36, %v1033_v18  ;;  %v1448_v57 = vpop.xlane.xlu1 %1447 }
 0x2c8   : > { %v1036_v45 = vadd.f32 %v4310_v5, %v1035_v19  ;;  %v4376_v31 = vmul.f32 %v4236_v47, %v4173_v50  ;;  %v4380_v51 = vmul.f32 %v4236_v47, %v4191_v15  ;;  %v1283_v4 = vadd.f32 %v1267_v49, %v1183_v24  ;;  %v1445_v19 = vpop.xlane.xlu0 %1444  ;;  %v4876_v15 = vld [vmem:[#allocation69_spill] sm:$0xff] }
 0x2c9   : > { %v1184_v56 = vadd.f32 %v1168_v62, %v1044_v27  ;;  %v4383_v30 = vmul.f32 %v4239_v14, %v1730_v8  ;;  %v4386_v52 = vmul.f32 %v4239_v14, %v1727_v22  ;;  %v1281_v55 = vadd.f32 %v1265_v41, %v1181_v3  ;;  %v4877_v27 = vld [vmem:[#allocation67_spill] sm:$0xff]  ;;  %v2697_v3 = vpop.f32.mrb[20].mxu0 }
 0x2ca   : > { %v1182_v18 = vadd.f32 %v1166_v20, %v1036_v45  ;;  %v4389_v36 = vmul.f32 %v4225_v39, %v1148_v40  ;;  %v4392_v50 = vmul.f32 %v4225_v39, %v1145_v37  ;;  %v1383_v58 = vadd.f32 %v4876_v15, %v1283_v4  ;;  %v4878_v45 = vld [vmem:[#allocation68_spill] sm:$0xff]  ;;  %v1048_v15 = vpop.f32.mrb[21].mxu0 }
 0x2cb   : > { %4875 = vst [vmem:[#allocation54_spill] sm:$0xff] %v4383_v30  ;;  %v1284_v49 = vadd.f32 %v1268_v9, %v1184_v56  ;;  %v1381_v62 = vadd.f32 %v4877_v27, %v1281_v55  ;;  %v4397_v8 = vmul.f32 %v4220_v12, %v1248_v35  ;;  %v4400_v22 = vmul.f32 %v4220_v12, %v1245_v48  ;;  %v1748_v9 = vpop.xlane.xlu1 %1747  ;;  %v4879_v56 = vld [vmem:[#allocation66_spill] sm:$0xff] }
 0x2cc   : > { %v1282_v41 = vadd.f32 %v1266_v44, %v1182_v18  ;;  %v1483_v20 = vadd.f32 %v1467_v61, %v1383_v58  ;;  %v4404_v40 = vmul.f32 %v4236_v47, %v1448_v57  ;;  %v4407_v37 = vmul.f32 %v4236_v47, %v1445_v19  ;;  %v1745_v58 = vpop.xlane.xlu0 %1744  ;;  %v4881_v61 = vld [vmem:[#allocation74_spill] sm:$0xff] }
 0x2cd   : > { %v1384_v24 = vadd.f32 %v4878_v45, %v1284_v49  ;;  %v1481_v4 = vadd.f32 %v1465_v60, %v1381_v62  ;;  %v1057_v35 = vadd.f32 %v2697_v3, %v4310_v5  ;;  %v4412_v48 = vmul.f32 %v4239_v14, %v1748_v9  ;;  %v2698_v49 = vpop.f32.mrb[22].mxu0  ;;  %v4883_v60 = vld [vmem:[#allocation72_spill] sm:$0xff]  ;;  %v4884_v9 = vld [vmem:[#allocation3_spill] sm:$0xff] }
 0x2ce   : > { %v1382_v55 = vadd.f32 %v4879_v56, %v1282_v41  ;;  %v1583_v44 = vadd.f32 %v4881_v61, %v1483_v20  ;;  %v1049_v18 = vadd.f32 %v4310_v5, %v1048_v15  ;;  %v4418_v19 = vmul.f32 %v4239_v14, %v1745_v58  ;;  %v1051_v3 = vpop.f32.mrb[23].mxu0  ;;  %v4886_v15 = vld [vmem:[#allocation77_spill] sm:$0xff] }
 0x2cf   : > { %4880 = vst [vmem:[#allocation55_spill] sm:$0xff] %v4412_v48  ;;  %v1484_v57 = vadd.f32 %v4297_v38, %v1384_v24  ;;  %v1581_v27 = vadd.f32 %v4883_v60, %v1481_v4  ;;  %v1187_v41 = vadd.f32 %v1171_v25, %v1057_v35  ;;  %v1060_v45 = vadd.f32 %v2698_v49, %v4310_v5  ;;  %v4885_v48 = vld [vmem:[#allocation73_spill] sm:$0xff]  ;;  %v1142_v24 = vpop.xlane.xlu1 %1141  ;;  %v4888_v35 = vld [vmem:[#allocation2_spill] sm:$0xff] }
 0x2d0   : > { %4882 = vst [vmem:[#allocation56_spill] sm:$0xff] %v4418_v19  ;;  %v1482_v62 = vadd.f32 %v4318_v17, %v1382_v55  ;;  %v1683_v56 = vadd.f32 %v4884_v9, %v1583_v44  ;;  %v1185_v61 = vadd.f32 %v1169_v59, %v1049_v18  ;;  %v1052_v38 = vadd.f32 %v4310_v5, %v1051_v3  ;;  %v4887_v19 = vld [vmem:[#allocation70_spill] sm:$0xff]  ;;  %v1139_v17 = vpop.xlane.xlu0 %1138  ;;  %v4889_v59 = vld [vmem:[#allocation76_spill] sm:$0xff]  ;;  %v4890_v18 = vld [vmem:[#allocation7_spill] sm:$0xff] }
 0x2d1   : > { %v1584_v20 = vadd.f32 %v4885_v48, %v1484_v57  ;;  %v4427_v58 = vadd.f32 %v4886_v15, %v1581_v27  ;;  %v1287_v4 = vadd.f32 %v4342_v21, %v1187_v41  ;;  %v1188_v25 = vadd.f32 %v4332_v26, %v1060_v45  ;;  %v4892_v41 = vld [vmem:[#allocation5_spill] sm:$0xff]  ;;  %v4893_v3 = vld [vmem:[#allocation6_spill] sm:$0xff]  ;;  %v4895_v15 = vld [vmem:[#allocation4_spill] sm:$0xff] }
 0x2d2   : > { %v1582_v30 = vadd.f32 %v4887_v19, %v1482_v62  ;;  %v1783_v55 = vadd.f32 %v4291_v23, %v1683_v56  ;;  %v1285_v49 = vadd.f32 %v1269_v54, %v1185_v61  ;;  %v1186_v48 = vadd.f32 %v1170_v53, %v1052_v38  ;;  %v4891_v62 = vld [vmem:[#allocation11_spill] sm:$0xff]  ;;  %v2701_v54 = vpop.f32.mrb[24].mxu0  ;;  %v4894_v38 = vld [vmem:[#allocation10_spill] sm:$0xff] }
 0x2d3   : > { %v1684_v44 = vadd.f32 %v4888_v35, %v1584_v20  ;;  %v1387_v60 = vadd.f32 %v4890_v18, %v1287_v4  ;;  %v1288_v27 = vadd.f32 %v4338_v2, %v1188_v25  ;;  %v1174_v19 = vmul.f32 %v4225_v39, %v1142_v24  ;;  %v1242_v53 = vpop.xlane.xlu1 %1241  ;;  %v1064_v20 = vpop.f32.mrb[25].mxu0 }
 0x2d4   : > { %v4435_v57 = vadd.f32 %v4889_v59, %v1582_v30  ;;  %v4441_v21 = vadd.f32 %v4891_v62, %v1783_v55  ;;  %v1385_v23 = vadd.f32 %v4892_v41, %v1285_v49  ;;  %v1286_v45 = vadd.f32 %v4369_v34, %v1186_v48  ;;  %v1239_v61 = vpop.xlane.xlu0 %1238  ;;  %v2702_v25 = vpop.f32.mrb[26].mxu0  ;;  %v4896_v55 = vld [vmem:[#allocation17_spill] sm:$0xff]  ;;  %v4899_v41 = vld [vmem:[#allocation16_spill] sm:$0xff] }
 0x2d5   : > { %v1784_v26 = vadd.f32 %v4303_v6, %v1684_v44  ;;  %v1487_v30 = vadd.f32 %v4351_v13, %v1387_v60  ;;  %v1388_v9 = vadd.f32 %v4893_v3, %v1288_v27  ;;  %v1173_v56 = vmul.f32 %v4225_v39, %v1139_v17  ;;  %v1067_v49 = vpop.f32.mrb[27].mxu0  ;;  %v4897_v48 = vld [vmem:[#allocation13_spill] sm:$0xff] }
 0x2d6   : > { %v1073_v2 = vadd.f32 %v2701_v54, %v4310_v5  ;;  %v1485_v6 = vadd.f32 %v4380_v51, %v1385_v23  ;;  %v1386_v4 = vadd.f32 %v4895_v15, %v1286_v45  ;;  %v1065_v34 = vadd.f32 %v4310_v5, %v1064_v20  ;;  %v4898_v62 = vld [vmem:[#allocation25_spill] sm:$0xff]  ;;  %v4903_v20 = vld [vmem:[#allocation31_spill] sm:$0xff] }
 0x2d7   : > { %v4451_v24 = vadd.f32 %v4894_v38, %v1784_v26  ;;  %v1587_v13 = vadd.f32 %v4896_v55, %v1487_v30  ;;  %v1488_v35 = vadd.f32 %v4346_v46, %v1388_v9  ;;  %v1274_v44 = vmul.f32 %v4220_v12, %v1242_v53  ;;  %v1442_v27 = vpop.xlane.xlu1 %1441  ;;  %v4900_v54 = vld [vmem:[#allocation21_spill] sm:$0xff]  ;;  %v4901_v30 = vld [vmem:[#allocation12_spill] sm:$0xff] }
 0x2d8   : > { %v1191_v17 = vadd.f32 %v4392_v50, %v1073_v2  ;;  %v1585_v59 = vadd.f32 %v4897_v48, %v1485_v6  ;;  %v1486_v18 = vadd.f32 %v4376_v31, %v1386_v4  ;;  %v1189_v60 = vadd.f32 %v1173_v56, %v1065_v34  ;;  %v1439_v45 = vpop.xlane.xlu0 %1438  ;;  %v4902_v56 = vld [vmem:[#allocation24_spill] sm:$0xff]  ;;  %v4905_v34 = vld [vmem:[#allocation29_spill] sm:$0xff] }
 0x2d9   : > { %v1273_v51 = vmul.f32 %v4220_v12, %v1239_v61  ;;  %v4464_v26 = vadd.f32 %v4898_v62, %v1587_v13  ;;  %v1588_v23 = vadd.f32 %v4899_v41, %v1488_v35  ;;  %v1076_v50 = vadd.f32 %v2702_v25, %v4310_v5  ;;  %v4904_v6 = vld [vmem:[#allocation20_spill] sm:$0xff]  ;;  %v2705_v35 = vpop.f32.mrb[28].mxu0 }
 0x2da   : > { %v1291_v46 = vadd.f32 %v4400_v22, %v1191_v17  ;;  %v4470_v53 = vadd.f32 %v4900_v54, %v1585_v59  ;;  %v1586_v3 = vadd.f32 %v4901_v30, %v1486_v18  ;;  %v1068_v9 = vadd.f32 %v4310_v5, %v1067_v49  ;;  %v1080_v18 = vpop.f32.mrb[29].mxu0 }
 0x2db   : > { %v1289_v31 = vadd.f32 %v1273_v51, %v1189_v60  ;;  %v4475_v2 = vadd.f32 %v4902_v56, %v1588_v23  ;;  %v1192_v38 = vadd.f32 %v4389_v36, %v1076_v50  ;;  %v1474_v22 = vmul.f32 %v4236_v47, %v1442_v27  ;;  %v1742_v13 = vpop.xlane.xlu1 %1741  ;;  %v2706_v62 = vpop.f32.mrb[30].mxu0  ;;  %v4906_v23 = vld [vmem:[#allocation30_spill] sm:$0xff] }
 0x2dc   : > { %v1391_v61 = vadd.f32 %v4903_v20, %v1291_v46  ;;  %v4481_v15 = vadd.f32 %v4904_v6, %v1586_v3  ;;  %v1190_v4 = vadd.f32 %v1174_v19, %v1068_v9  ;;  %v1473_v55 = vmul.f32 %v4236_v47, %v1439_v45  ;;  %v1739_v59 = vpop.xlane.xlu0 %1738  ;;  %v1083_v50 = vpop.f32.mrb[31].mxu0  ;;  %v4907_v45 = vld [vmem:[#allocation28_spill] sm:$0xff] }
 0x2dd   : > { %v1389_v25 = vadd.f32 %v4905_v34, %v1289_v31  ;;  %v1292_v49 = vadd.f32 %v4397_v8, %v1192_v38  ;;  %v1774_v48 = vmul.f32 %v4239_v14, %v1742_v13  ;;  %v1089_v36 = vadd.f32 %v2705_v35, %v4310_v5  ;;  %v4908_v31 = vld [vmem:[#allocation19_spill] sm:$0xff] }
 0x2de   : > { %v1491_v17 = vadd.f32 %v4407_v37, %v1391_v61  ;;  %v1290_v60 = vadd.f32 %v1274_v44, %v1190_v4  ;;  %v1773_v19 = vmul.f32 %v4239_v14, %v1739_v59  ;;  %v4491_v27 = vadd.f32 %v4310_v5, %v1080_v18  ;;  %v4910_v4 = vld [vmem:[#allocation8_spill] sm:$0xff]  ;;  %v4911_v34 = vld [vmem:[#allocation15_spill] sm:$0xff] }
 0x2df   : > { %v1489_v51 = vadd.f32 %v1473_v55, %v1389_v25  ;;  %v1392_v37 = vadd.f32 %v4906_v23, %v1292_v49  ;;  %v1092_v8 = vadd.f32 %v2706_v62, %v4310_v5  ;;  %v1781_v46 = vadd.f32 %v4328_v43, %v4427_v58  ;;  %v1160_v30 = vpop.xlane.xlu1 %1159  ;;  %v4909_v58 = vld [vmem:[#allocation9_spill] sm:$0xff]  ;;  %v4912_v25 = vld [vmem:[#allocation18_spill] sm:$0xff]  ;;  %v4914_v59 = vld [vmem:[#allocation23_spill] sm:$0xff] }
 0x2e0   : > { %v1591_v41 = vadd.f32 %v4141_v32, %v1491_v17  ;;  %v1390_v54 = vadd.f32 %v4907_v45, %v1290_v60  ;;  %v1782_v3 = vadd.f32 %v4324_v11, %v4435_v57  ;;  %v1983_v9 = vadd.f32 %v4908_v31, %v4441_v21  ;;  %v1157_v43 = vpop.xlane.xlu0 %1156  ;;  %v4913_v17 = vld [vmem:[#allocation14_spill] sm:$0xff]  ;;  %v4915_v60 = vld [vmem:[#allocation27_spill] sm:$0xff] }
 0x2e1   : > { %v1589_v44 = vadd.f32 %v4123_v10, %v1489_v51  ;;  %v1492_v56 = vadd.f32 %v4404_v40, %v1392_v37  ;;  %v1180_v20 = vmul.f32 %v4225_v39, %v1160_v30  ;;  %v1881_v61 = vadd.f32 %v4909_v58, %v1781_v46  ;;  %v4916_v51 = vld [vmem:[#allocation26_spill] sm:$0xff]  ;;  %v4918_v58 = vld [vmem:[#allocation83_spill] sm:$0xff] }
 0x2e2   : > { %v4505_v32 = vadd.f32 %v4177_v29, %v1591_v41  ;;  %v1490_v38 = vadd.f32 %v1474_v22, %v1390_v54  ;;  %v1179_v6 = vmul.f32 %v4225_v39, %v1157_v43  ;;  %v1882_v11 = vadd.f32 %v4910_v4, %v1782_v3  ;;  %v4921_v4 = vld [vmem:[#allocation33_spill] sm:$0xff] }
 0x2e3   : > { %v1689_v10 = vadd.f32 %v4157_v33, %v1589_v44  ;;  %v1592_v57 = vadd.f32 %v4137_v63, %v1492_v56  ;;  %v1196_v21 = vadd.f32 %v1180_v20, %v1092_v8  ;;  %v1981_v29 = vadd.f32 %v4911_v34, %v1881_v61  ;;  %v1260_v49 = vpop.xlane.xlu1 %1259 }
 0x2e4   : > { %v1984_v40 = vadd.f32 %v4912_v25, %v4451_v24  ;;  %v1590_v55 = vadd.f32 %v4119_v0, %v1490_v38  ;;  %v1195_v35 = vadd.f32 %v1179_v6, %v1089_v36  ;;  %v1982_v22 = vadd.f32 %v4913_v17, %v1882_v11  ;;  %v1257_v41 = vpop.xlane.xlu0 %1256  ;;  %v4917_v0 = vld [vmem:[#allocation22_spill] sm:$0xff]  ;;  %v4919_v38 = vld [vmem:[#allocation84_spill] sm:$0xff] }
 0x2e5   : > { %v1789_v13 = vadd.f32 %v1773_v19, %v1689_v10  ;;  %v4520_v33 = vadd.f32 %v4169_v1, %v1592_v57  ;;  %v2081_v18 = vadd.f32 %v4914_v59, %v1981_v29  ;;  %v2083_v63 = vadd.f32 %v4915_v60, %v1983_v9  ;;  %v4920_v10 = vld [vmem:[#allocation54_spill] sm:$0xff]  ;;  %v4924_v29 = vld [vmem:[#allocation52_spill] sm:$0xff]  ;;  %v4928_v59 = vld [vmem:[#allocation35_spill] sm:$0xff] }
 0x2e6   : > { %v2084_v62 = vadd.f32 %v4916_v51, %v1984_v40  ;;  %v1690_v23 = vadd.f32 %v4153_v42, %v1590_v55  ;;  %v2082_v19 = vadd.f32 %v4917_v0, %v1982_v22  ;;  %v1280_v36 = vmul.f32 %v4220_v12, %v1260_v49  ;;  %v4929_v60 = vld [vmem:[#allocation34_spill] sm:$0xff]  ;;  %v4930_v51 = vld [vmem:[#allocation89_spill] sm:$0xff] }
 0x2e7   : > { %v1889_v24 = vadd.f32 %v4207_v28, %v1789_v13  ;;  %v2097_v37 = vmax.f32 %v2081_v18, 0.0  ;;  %v2099_v8 = vmax.f32 %v2083_v63, 0.0  ;;  %v1279_v1 = vmul.f32 %v4220_v12, %v1257_v41  ;;  %v1460_v3 = vpop.xlane.xlu1 %1459  ;;  %v4925_v13 = vld [vmem:[#allocation32_spill] sm:$0xff]  ;;  %v4933_v0 = vld [vmem:[#allocation93_spill] sm:$0xff] }
 0x2e8   : > { %v2100_v46 = vmax.f32 %v2084_v62, 0.0  ;;  %v1790_v45 = vadd.f32 %v1774_v48, %v1690_v23  ;;  %v2098_v44 = vmax.f32 %v2082_v19, 0.0  ;;  %v1296_v30 = vadd.f32 %v1280_v36, %v1196_v21  ;;  %v1457_v28 = vpop.xlane.xlu0 %1456  ;;  %v4922_v21 = vld [vmem:[#allocation87_spill] sm:$0xff]  ;;  %v4931_v62 = vld [vmem:[#allocation36_spill] sm:$0xff]  ;;  %v4932_v23 = vld [vmem:[#allocation81_spill] sm:$0xff] }
 0x2e9   : > { %v1989_v54 = vadd.f32 %v4233_v16, %v1889_v24  ;;  %v1295_v9 = vadd.f32 %v1279_v1, %v1195_v35  ;;  %v1480_v42 = vmul.f32 %v4236_v47, %v1460_v3  ;;  %v1785_v56 = vadd.f32 %v4386_v52, %v4470_v53  ;;  %v4934_v36 = vld [vmem:[#allocation79_spill] sm:$0xff]  ;;  %v4936_v1 = vld [vmem:[#allocation94_spill] sm:$0xff] }
 0x2ea   : > { %v2114_v31 = vpack.c.bf16 %v2100_v46, %v2099_v8  ;;  %v1890_v20 = vadd.f32 %v4203_v7, %v1790_v45  ;;  %v2113_v43 = vpack.c.bf16 %v2098_v44, %v2097_v37  ;;  %v1396_v61 = vadd.f32 %v4918_v58, %v1296_v30  ;;  %v4923_v7 = vld [vmem:[#allocation53_spill] sm:$0xff]  ;;  %v4935_v8 = vld [vmem:[#allocation38_spill] sm:$0xff]  ;;  %v4937_v30 = vld [vmem:[#allocation92_spill] sm:$0xff] }
 0x2eb   : > { %v1479_v48 = vmul.f32 %v4236_v47, %v1457_v28  ;;  %v1395_v16 = vadd.f32 %v4919_v38, %v1295_v9  ;;  %v1786_v6 = vadd.f32 %v4920_v10, %v4481_v15  ;;  %v1885_v11 = vadd.f32 %v4921_v4, %v1785_v56  ;;  %v1760_v40 = vpop.xlane.xlu1 %1759  ;;  %v4926_v15 = vld [vmem:[#allocation37_spill] sm:$0xff]  ;;  %v4939_v28 = vld [vmem:[#allocation95_spill] sm:$0xff]  ;;  %v4940_v58 = vld [vmem:[#allocation40_spill] sm:$0xff] }
 0x2ec   : > { %v1084_v57 = vadd.f32 %v4310_v5, %v1083_v50  ;;  %v1990_v34 = vadd.f32 %v4922_v21, %v1890_v20  ;;  %2723 = vmatprep.mubr.bf16.mxu1 %v2113_v43  ;;  %v1496_v52 = vadd.f32 %v1480_v42, %v1396_v61  ;;  %v1787_v53 = vadd.f32 %v4923_v7, %v4464_v26  ;;  %v1757_v5 = vpop.xlane.xlu0 %1756  ;;  %v4927_v50 = vld [vmem:[#allocation88_spill] sm:$0xff] }
 0x2ed   : > { %v1788_v25 = vadd.f32 %v4924_v29, %v4475_v2  ;;  %2724 = vmatmul.mubr.bf16.vlgmr.msra.gmra.mrb[16].mxu1 %v2114_v31  ;;  %v1495_v55 = vadd.f32 %v1479_v48, %v1395_v16  ;;  %v1886_v35 = vadd.f32 %v4925_v13, %v1786_v6  ;;  %v1985_v17 = vadd.f32 %v4926_v15, %v1885_v11  ;;  %v4938_v31 = vld [vmem:[#allocation80_spill] sm:$0xff] }
 0x2ee   : > { %v1780_v22 = vmul.f32 %v4239_v14, %v1760_v40  ;;  %v1596_v49 = vadd.f32 %v4927_v50, %v1496_v52  ;;  %v1887_v18 = vadd.f32 %v4928_v59, %v1787_v53  ;;  %v1779_v26 = vmul.f32 %v4239_v14, %v1757_v5 }
 0x2ef   : > { %v1888_v63 = vadd.f32 %v4929_v60, %v1788_v25  ;;  %v1595_v2 = vadd.f32 %v4930_v51, %v1495_v55  ;;  %v1986_v41 = vadd.f32 %v4931_v62, %v1886_v35  ;;  %v2085_v24 = vadd.f32 %v4932_v23, %v1985_v17  ;;  %v1154_v44 = vpop.xlane.xlu1 %1153  ;;  %v4942_v25 = vld [vmem:[#allocation56_spill] sm:$0xff]  ;;  %v4943_v55 = vld [vmem:[#allocation55_spill] sm:$0xff]  ;;  %v4947_v60 = vld [vmem:[#allocation97_spill] sm:$0xff] }
 0x2f0   : > { %v2089_v19 = vadd.f32 %v4933_v0, %v1989_v54  ;;  %v1987_v37 = vadd.f32 %v4934_v36, %v1887_v18  ;;  %v1696_v45 = vadd.f32 %v4936_v1, %v1596_v49  ;;  %v2090_v3 = vadd.f32 %v4937_v30, %v1990_v34  ;;  %v1151_v43 = vpop.xlane.xlu0 %1150  ;;  %v4941_v54 = vld [vmem:[#allocation39_spill] sm:$0xff]  ;;  %v4946_v49 = vld [vmem:[#allocation85_spill] sm:$0xff]  ;;  %v4950_v51 = vld [vmem:[#allocation46_spill] sm:$0xff] }
 0x2f1   : > { %v1988_v46 = vadd.f32 %v4935_v8, %v1888_v63  ;;  %v2086_v9 = vadd.f32 %v4938_v31, %v1986_v41  ;;  %v2101_v42 = vmax.f32 %v2085_v24, 0.0  ;;  %v1695_v56 = vadd.f32 %v4939_v28, %v1595_v2  ;;  %v4948_v63 = vld [vmem:[#allocation41_spill] sm:$0xff]  ;;  %v4951_v2 = vld [vmem:[#allocation78_spill] sm:$0xff]  ;;  %v4952_v41 = vld [vmem:[#allocation47_spill] sm:$0xff] }
 0x2f2   : > { %v1178_v20 = vmul.f32 %v4225_v39, %v1154_v44  ;;  %v2087_v61 = vadd.f32 %v4940_v58, %v1987_v37  ;;  %v1796_v38 = vadd.f32 %v1780_v22, %v1696_v45  ;;  %v1177_v16 = vmul.f32 %v4225_v39, %v1151_v43  ;;  %v4944_v22 = vld [vmem:[#allocation96_spill] sm:$0xff]  ;;  %v4953_v0 = vld [vmem:[#allocation91_spill] sm:$0xff]  ;;  %v4954_v36 = vld [vmem:[#allocation90_spill] sm:$0xff] }
 0x2f3   : > { %v2088_v48 = vadd.f32 %v4941_v54, %v1988_v46  ;;  %v2102_v10 = vmax.f32 %v2086_v9, 0.0  ;;  %v1795_v6 = vadd.f32 %v1779_v26, %v1695_v56  ;;  %v2105_v11 = vmax.f32 %v2089_v19, 0.0  ;;  %v1254_v53 = vpop.xlane.xlu1 %1253  ;;  %v4949_v26 = vld [vmem:[#allocation62_spill] sm:$0xff]  ;;  %v4957_v31 = vld [vmem:[#allocation64_spill] sm:$0xff] }
 0x2f4   : > { %v1194_v4 = vadd.f32 %v1178_v20, %v1084_v57  ;;  %v2103_v21 = vmax.f32 %v2087_v61, 0.0  ;;  %v1193_v52 = vadd.f32 %v1177_v16, %v4491_v27  ;;  %v2106_v7 = vmax.f32 %v2090_v3, 0.0  ;;  %v1251_v39 = vpop.xlane.xlu0 %1250  ;;  %v4945_v27 = vld [vmem:[#allocation86_spill] sm:$0xff]  ;;  %v4958_v20 = vld [vmem:[#allocation43_spill] sm:$0xff]  ;;  %v4959_v54 = vld [vmem:[#allocation44_spill] sm:$0xff] }
 0x2f5   : > { %v2104_v34 = vmax.f32 %v2088_v48, 0.0  ;;  %v2115_v29 = vpack.c.bf16 %v2102_v10, %v2101_v42  ;;  %v1791_v40 = vadd.f32 %v4942_v25, %v4505_v32  ;;  %v1792_v13 = vadd.f32 %v4943_v55, %v4520_v33  ;;  %v4955_v8 = vld [vmem:[#allocation82_spill] sm:$0xff]  ;;  %v4960_v48 = vld [vmem:[#allocation65_spill] sm:$0xff]  ;;  %v4962_v55 = vld [vmem:[#allocation48_spill] sm:$0xff] }
 0x2f6   : > { %v1278_v35 = vmul.f32 %v4220_v12, %v1254_v53  ;;  %v2117_v17 = vpack.c.bf16 %v2106_v7, %v2105_v11  ;;  %v1277_v57 = vmul.f32 %v4220_v12, %v1251_v39  ;;  %v1896_v5 = vadd.f32 %v4944_v22, %v1796_v38  ;;  %v4956_v3 = vld [vmem:[#allocation42_spill] sm:$0xff]  ;;  %v4961_v11 = vld [vmem:[#allocation45_spill] sm:$0xff] }
 0x2f7   : > { %v2116_v15 = vpack.c.bf16 %v2104_v34, %v2103_v21  ;;  %2727 = vmatprep.mubr.bf16.mxu1 %v2115_v29  ;;  %v1891_v50 = vadd.f32 %v4945_v27, %v1791_v40  ;;  %v1892_v59 = vadd.f32 %v4946_v49, %v1792_v13  ;;  %v1895_v32 = vadd.f32 %v4947_v60, %v1795_v6  ;;  %v1454_v24 = vpop.xlane.xlu1 %1453  ;;  %v4963_v13 = vld [vmem:[#allocation71_spill] sm:$0xff]  ;;  %v4965_v27 = vld [vmem:[#allocation50_spill] sm:$0xff] }
 0x2f8   : > { %v1294_v18 = vadd.f32 %v1278_v35, %v1194_v4  ;;  %v1377_v33 = vmul.f32 %v4949_v26, %v4948_v63  ;;  %v2076_v62 = vmul.f32 %v4951_v2, %v4950_v51  ;;  %v2075_v23 = vmul.f32 %v4951_v2, %v4952_v41  ;;  %v1451_v45 = vpop.xlane.xlu0 %1450  ;;  %v4967_v63 = vld [vmem:[#allocation51_spill] sm:$0xff] }
 0x2f9   : > { %2728 = vmatmul.mubr.bf16.gmra.mrb[20].mxu1 %v2116_v15  ;;  %v1293_v12 = vadd.f32 %v1277_v57, %v1193_v52  ;;  %v1991_v19 = vadd.f32 %v4953_v0, %v1891_v50  ;;  %v1992_v37 = vadd.f32 %v4954_v36, %v1892_v59  ;;  %v1478_v1 = vmul.f32 %v4236_v47, %v1454_v24  ;;  %v4964_v15 = vld [vmem:[#allocation49_spill] sm:$0xff]  ;;  %v4966_v50 = vld [vmem:[#allocation75_spill] sm:$0xff] }
 0x2fa   : > { %2731 = vmatprep.mubr.bf16.mxu1 %v2117_v17  ;;  %v1394_v46 = vadd.f32 %v4955_v8, %v1294_v18  ;;  %v1477_v30 = vmul.f32 %v4236_v47, %v1451_v45  ;;  %v1578_v9 = vmul.f32 %v4957_v31, %v4956_v3  ;;  %v1577_v43 = vmul.f32 %v4957_v31, %v4958_v20 }
 0x2fb   : > { %v1393_v44 = vadd.f32 %v1377_v33, %v1293_v12  ;;  %v2091_v42 = vadd.f32 %v2075_v23, %v1991_v19  ;;  %v2092_v28 = vadd.f32 %v2076_v62, %v1992_v37  ;;  %v1960_v61 = vpop.xlane.xlu1 %1959  ;;  %v1678_v38 = vmul.f32 %v4960_v48, %v4959_v54 }
 0x2fc   : > { %v1494_v56 = vadd.f32 %v1478_v1, %v1394_v46  ;;  %v1957_v4 = vpop.xlane.xlu0 %1956  ;;  %v1677_v47 = vmul.f32 %v4960_v48, %v4961_v11  ;;  %v1878_v35 = vmul.f32 %v4963_v13, %v4962_v55  ;;  %v1877_v17 = vmul.f32 %v4963_v13, %v4964_v15 }
 0x2fd   : > { %v1493_v58 = vadd.f32 %v1477_v30, %v1393_v44  ;;  %v2107_v16 = vmax.f32 %v2091_v42, 0.0  ;;  %v2108_v10 = vmax.f32 %v2092_v28, 0.0  ;;  %v1978_v49 = vmul.f32 %v4966_v50, %v4965_v27 }
 0x2fe   : > { %v1594_v6 = vadd.f32 %v1578_v9, %v1494_v56  ;;  %v1980_v59 = vmul.f32 %v4966_v50, %v1960_v61  ;;  %v1977_v26 = vmul.f32 %v4966_v50, %v4967_v63 }
 0x2ff   : > { %v1593_v21 = vadd.f32 %v1577_v43, %v1493_v58  ;;  %v2118_v34 = vpack.c.bf16 %v2108_v10, %v2107_v16  ;;  %v1754_v7 = vpop.xlane.xlu1 %1753 }
 0x300   : > { %v1694_v52 = vadd.f32 %v1678_v38, %v1594_v6  ;;  %v1778_v29 = vmul.f32 %v4239_v14, %v1754_v7  ;;  %v1751_v25 = vpop.xlane.xlu0 %1750  ;;  %v1996_v24 = vadd.f32 %v1980_v59, %v1896_v5  ;;  %v4617_v5 = vld [vmem:[%s4671_s11] ss:$0 sm:$0xff] }
 0x301   : > { %v1693_v53 = vadd.f32 %v1677_v47, %v1593_v21  ;;  %2732 = vmatmul.mubr.bf16.gmra.mrb[24].mxu1 %v2118_v34  ;;  %v1777_v40 = vmul.f32 %v4239_v14, %v1751_v25  ;;  %v1979_v14 = vmul.f32 %v4966_v50, %v1957_v4 }
 0x302   : > { %v1794_v39 = vadd.f32 %v1778_v29, %v1694_v52 }
 0x303   : > { %v1793_v57 = vadd.f32 %v1777_v40, %v1693_v53  ;;  %v2054_v22 = vpop.xlane.xlu1 %2053  ;;  %v1995_v37 = vadd.f32 %v1979_v14, %v1895_v32 }
 0x304   : > { %v1894_v18 = vadd.f32 %v1878_v35, %v1794_v39  ;;  %v2051_v60 = vpop.xlane.xlu0 %2050  ;;  %v2078_v62 = vmul.f32 %v4951_v2, %v2054_v22 }
 0x305   : > { %v1893_v33 = vadd.f32 %v1877_v17, %v1793_v57  ;;  %v2077_v23 = vmul.f32 %v4951_v2, %v2051_v60 }
 0x306   : > { %v1994_v51 = vadd.f32 %v1978_v49, %v1894_v18 }
 0x307   : > { %v1993_v41 = vadd.f32 %v1977_v26, %v1893_v33  ;;  %v2060_v12 = vpop.xlane.xlu1 %2059 }
 0x308   : > { %v2094_v0 = vadd.f32 %v2078_v62, %v1994_v51  ;;  %v2080_v19 = vmul.f32 %v4951_v2, %v2060_v12  ;;  %v2057_v36 = vpop.xlane.xlu0 %2056 }
 0x309   : > { %v2093_v8 = vadd.f32 %v2077_v23, %v1993_v41  ;;  %v2079_v46 = vmul.f32 %v4951_v2, %v2057_v36 }
 0x30a   : > { %v2110_v1 = vmax.f32 %v2094_v0, 0.0  ;;  %v2096_v45 = vadd.f32 %v2080_v19, %v1996_v24 }
 0x30b   : > { %v2109_v44 = vmax.f32 %v2093_v8, 0.0  ;;  %v2095_v30 = vadd.f32 %v2079_v46, %v1995_v37 }
 0x30c   : > { %v2112_v3 = vmax.f32 %v2096_v45, 0.0 }
 0x30d   : > { %v2111_v31 = vmax.f32 %v2095_v30, 0.0  ;;  %v2119_v9 = vpack.c.bf16 %v2110_v1, %v2109_v44 }
 0x30f   : > { %2735 = vmatprep.mubr.bf16.mxu1 %v2119_v9  ;;  %v2120_v42 = vpack.c.bf16 %v2112_v3, %v2111_v31 }
 0x311   : > { %2736 = vmatmul.mubr.bf16.gmra.mrb[28].mxu1 %v2120_v42 }
 0x3c0   : > { %v2725_v28 = vpop.f32.mrb[16].mxu1 }
 0x3c1   : > { %v2235_v32 = vadd.f32 %v2725_v28, %v4617_v5  ;;  %v2226_v56 = vpop.f32.mrb[17].mxu1 }
 0x3c2   : > { %v2227_v2 = vadd.f32 %v4617_v5, %v2226_v56  ;;  %v2726_v20 = vpop.f32.mrb[18].mxu1 }
 0x3c3   : > { %v2547_v43 = vmul.f32 -1.442695, %v2235_v32  ;;  %v2238_v58 = vadd.f32 %v2726_v20, %v4617_v5  ;;  %v2229_v61 = vpop.f32.mrb[19].mxu1 }
 0x3c4   : > { %v2545_v54 = vmul.f32 -1.442695, %v2227_v2  ;;  %v2230_v48 = vadd.f32 %v4617_v5, %v2229_v61 }
 0x3c5   : > { %2772 = vpow2.f32 %v2547_v43  ;;  %v2548_v38 = vmul.f32 -1.442695, %v2238_v58 }
 0x3c6   : > { %2774 = vpow2.f32 %v2545_v54  ;;  %v2546_v16 = vmul.f32 -1.442695, %v2230_v48 }
 0x3c7   : > { %2776 = vpow2.f32 %v2548_v38 }
 0x3c8   : > { %2778 = vpow2.f32 %v2546_v16 }
 0x3cc   : > { %v2729_v10 = vpop.f32.mrb[20].mxu1 }
 0x3cd   : > { %v2251_v6 = vadd.f32 %v2729_v10, %v4617_v5  ;;  %v2242_v4 = vpop.f32.mrb[21].mxu1 }
 0x3ce   : > { %v2243_v11 = vadd.f32 %v4617_v5, %v2242_v4  ;;  %v2730_v47 = vpop.f32.mrb[22].mxu1 }
 0x3cf   : > { %v2551_v21 = vmul.f32 -1.442695, %v2251_v6  ;;  %v2254_v34 = vadd.f32 %v2730_v47, %v4617_v5  ;;  %v2245_v52 = vpop.f32.mrb[23].mxu1  ;;  %v2773_v7 = vpop.eup %2772 }
 0x3d0   : > { %v2549_v53 = vmul.f32 -1.442695, %v2243_v11  ;;  %v2246_v29 = vadd.f32 %v4617_v5, %v2245_v52  ;;  %v2775_v25 = vpop.eup %2774  ;;  %v2339_v40 = vadd.f32 1.0, %v2773_v7 }
 0x3d1   : > { %2780 = vpow2.f32 %v2551_v21  ;;  %v2777_v55 = vpop.eup %2776  ;;  %v2337_v13 = vadd.f32 1.0, %v2775_v25  ;;  %v2552_v15 = vmul.f32 -1.442695, %v2254_v34 }
 0x3d2   : > { %2782 = vpow2.f32 %v2549_v53  ;;  %v2779_v35 = vpop.eup %2778  ;;  %v2340_v39 = vadd.f32 1.0, %v2777_v55  ;;  %v2550_v57 = vmul.f32 -1.442695, %v2246_v29 }
 0x3d3   : > { %2784 = vrcp.f32 %v2339_v40  ;;  %v2338_v17 = vadd.f32 1.0, %v2779_v35 }
 0x3d4   : > { %2786 = vrcp.f32 %v2337_v13  ;;  %v2733_v22 = vpop.f32.mrb[24].mxu1 }
 0x3d5   : > { %2788 = vrcp.f32 %v2340_v39  ;;  %v2267_v27 = vadd.f32 %v2733_v22, %v4617_v5  ;;  %v2258_v50 = vpop.f32.mrb[25].mxu1 }
 0x3d6   : > { %2790 = vrcp.f32 %v2338_v17  ;;  %v2259_v49 = vadd.f32 %v4617_v5, %v2258_v50  ;;  %v2734_v59 = vpop.f32.mrb[26].mxu1 }
 0x3d7   : > { %2792 = vpow2.f32 %v2552_v15  ;;  %v2555_v18 = vmul.f32 -1.442695, %v2267_v27  ;;  %v2270_v60 = vadd.f32 %v2734_v59, %v4617_v5  ;;  %v2261_v63 = vpop.f32.mrb[27].mxu1 }
 0x3d8   : > { %2794 = vpow2.f32 %v2550_v57  ;;  %v2553_v26 = vmul.f32 -1.442695, %v2259_v49  ;;  %v2262_v14 = vadd.f32 %v4617_v5, %v2261_v63 }
 0x3d9   : > { %2796 = vpow2.f32 %v2555_v18  ;;  %v2556_v33 = vmul.f32 -1.442695, %v2270_v60 }
 0x3da   : > { %2798 = vpow2.f32 %v2553_v26  ;;  %v2554_v62 = vmul.f32 -1.442695, %v2262_v14 }
 0x3db   : > { %v2781_v51 = vpop.eup %2780  ;;  %2800 = vpow2.f32 %v2556_v33 }
 0x3dc   : > { %v2783_v41 = vpop.eup %2782  ;;  %v2343_v23 = vadd.f32 1.0, %v2781_v51  ;;  %2802 = vpow2.f32 %v2554_v62 }
 0x3dd   : > { %v2785_v12 = vpop.eup %2784  ;;  %v2341_v24 = vadd.f32 1.0, %v2783_v41 }
 0x3de   : > { %v2787_v0 = vpop.eup %2786  ;;  %2387 = vst [vmem:[%s4635_s18 + $0x10] sm:$0xff] %v2785_v12  ;;  %2804 = vrcp.f32 %v2343_v23 }
 0x3df   : > { %v2789_v19 = vpop.eup %2788  ;;  %2385 = vst [vmem:[%s4635_s18] sm:$0xff] %v2787_v0  ;;  %2806 = vrcp.f32 %v2341_v24 }
 0x3e0   : > { %v2791_v36 = vpop.eup %2790  ;;  %2388 = vst [vmem:[%s4635_s18 + $0x18] sm:$0xff] %v2789_v19 }
 0x3e1   : > { %v2793_v37 = vpop.eup %2792  ;;  %2386 = vst [vmem:[%s4635_s18 + $0x8] sm:$0xff] %v2791_v36 }
 0x3e2   : > { %v2795_v8 = vpop.eup %2794  ;;  %v2344_v46 = vadd.f32 1.0, %v2793_v37 }
 0x3e3   : > { %v2342_v1 = vadd.f32 1.0, %v2795_v8  ;;  %v2797_v45 = vpop.eup %2796 }
 0x3e4   : > { %2808 = vrcp.f32 %v2344_v46  ;;  %v2799_v44 = vpop.eup %2798  ;;  %v2347_v30 = vadd.f32 1.0, %v2797_v45  ;;  %v2737_v9 = vpop.f32.mrb[28].mxu1 }
 0x3e5   : > { %2810 = vrcp.f32 %v2342_v1  ;;  %v2801_v3 = vpop.eup %2800  ;;  %v2345_v31 = vadd.f32 1.0, %v2799_v44  ;;  %v2283_v32 = vadd.f32 %v2737_v9, %v4617_v5  ;;  %v2274_v56 = vpop.f32.mrb[29].mxu1 }
 0x3e6   : > { %v2803_v42 = vpop.eup %2802  ;;  %2812 = vrcp.f32 %v2347_v30  ;;  %v2348_v28 = vadd.f32 1.0, %v2801_v3  ;;  %v2275_v43 = vadd.f32 %v4617_v5, %v2274_v56  ;;  %v2738_v58 = vpop.f32.mrb[30].mxu1 }
 0x3e7   : > { %2814 = vrcp.f32 %v2345_v31  ;;  %v2346_v20 = vadd.f32 1.0, %v2803_v42  ;;  %v2559_v54 = vmul.f32 -1.442695, %v2283_v32  ;;  %v2286_v48 = vadd.f32 %v2738_v58, %v4617_v5  ;;  %v2277_v38 = vpop.f32.mrb[31].mxu1 }
 0x3e8   : > { %v2805_v2 = vpop.eup %2804  ;;  %2816 = vrcp.f32 %v2348_v28  ;;  %v2557_v16 = vmul.f32 -1.442695, %v2275_v43  ;;  %v2278_v10 = vadd.f32 %v4617_v5, %v2277_v38 }
 0x3e9   : > { %v2807_v61 = vpop.eup %2806  ;;  %2391 = vst [vmem:[%s4635_s18 + $0x30] sm:$0xff] %v2805_v2  ;;  %2818 = vrcp.f32 %v2346_v20  ;;  %v2560_v6 = vmul.f32 -1.442695, %v2286_v48 }
 0x3ea   : > { %2389 = vst [vmem:[%s4635_s18 + $0x20] sm:$0xff] %v2807_v61  ;;  %2820 = vpow2.f32 %v2559_v54  ;;  %v2558_v4 = vmul.f32 -1.442695, %v2278_v10 }
 0x3eb   : > { %2822 = vpow2.f32 %v2557_v16 }
 0x3ec   : > { %2824 = vpow2.f32 %v2560_v6 }
 0x3ed   : > { %2826 = vpow2.f32 %v2558_v4 }
 0x3ee   : > { %v2809_v11 = vpop.eup %2808 }
 0x3ef   : > { %v2811_v47 = vpop.eup %2810  ;;  %2392 = vst [vmem:[%s4635_s18 + $0x38] sm:$0xff] %v2809_v11 }
 0x3f0   : > { %2390 = vst [vmem:[%s4635_s18 + $0x28] sm:$0xff] %v2811_v47  ;;  %v2813_v21 = vpop.eup %2812 }
 0x3f1   : > { %v2815_v34 = vpop.eup %2814  ;;  %2395 = vst [vmem:[%s4635_s18 + $0x50] sm:$0xff] %v2813_v21 }
 0x3f2   : > { %v2817_v52 = vpop.eup %2816  ;;  %2393 = vst [vmem:[%s4635_s18 + $0x40] sm:$0xff] %v2815_v34 }
 0x3f3   : > { %v2819_v7 = vpop.eup %2818  ;;  %2396 = vst [vmem:[%s4635_s18 + $0x58] sm:$0xff] %v2817_v52 }
 0x3f4   : > { %v2821_v5 = vpop.eup %2820  ;;  %2394 = vst [vmem:[%s4635_s18 + $0x48] sm:$0xff] %v2819_v7 }
 0x3f5   : > { %v2823_v53 = vpop.eup %2822  ;;  %v2351_v29 = vadd.f32 1.0, %v2821_v5 }
 0x3f6   : > { %v2825_v25 = vpop.eup %2824  ;;  %v2349_v40 = vadd.f32 1.0, %v2823_v53 }
 0x3f7   : > { %v2827_v55 = vpop.eup %2826  ;;  %2828 = vrcp.f32 %v2351_v29  ;;  %v2352_v13 = vadd.f32 1.0, %v2825_v25 }
 0x3f8   : > { %2830 = vrcp.f32 %v2349_v40  ;;  %v2350_v35 = vadd.f32 1.0, %v2827_v55 }
 0x3f9   : > { %2832 = vrcp.f32 %v2352_v13 }
 0x3fa   : > { %2834 = vrcp.f32 %v2350_v35 }
 0x401   : > { %v2829_v39 = vpop.eup %2828 }
 0x402   : > { %v2831_v15 = vpop.eup %2830  ;;  %2399 = vst [vmem:[%s4635_s18 + $0x70] sm:$0xff] %v2829_v39 }
 0x403   : > { %v2833_v17 = vpop.eup %2832  ;;  %2397 = vst [vmem:[%s4635_s18 + $0x60] sm:$0xff] %v2831_v15 }
 0x404   : > { %v2835_v57 = vpop.eup %2834  ;;  %2400 = vst [vmem:[%s4635_s18 + $0x78] sm:$0xff] %v2833_v17 }
 0x405   : > { %2398 = vst [vmem:[%s4635_s18 + $0x68] sm:$0xff] %v2835_v57 }
 0x406 PF: > { %s22_s21 = sadd.s32 1, %s2856_s21  }
 0x407   : > { %p19_p4 = scmp.ge.s32.totalorder %s22_s21, 4  }
 0x409   :  { %21 = sbr.rel (!%p19_p4) target bundleno = 1 (0x1), region = 107 }

</bundles_post_ra>
